<compile_context>
chip_gen: v7x
topology: tpu7x:2x2x1
jax: 0.10.0
libtpu: 0.0.40
codegen_flags: <defaults>
</compile_context>

<pallas_src>
import jax
import jax.numpy as jnp
from jax.experimental import pallas as pl
from jax.experimental.pallas import tpu as pltpu

K = 3  # conv kernel size (3x3, stride=1, padding=1)


def net_kernel(xpad_ref, cw_ref, cb_ref, fw_ref, fb_ref, out_ref):
    # xpad_ref: (B, H+2, W+2, Cin)  zero-padded NHWC activations
    # cw_ref:   (K, K, Cin, Cout)   conv weight (kh, kw, cin, cout)
    # cb_ref:   (1, Cout)           conv bias
    # fw_ref:   (Cout, Nclass)      fc weight (transposed vs PyTorch)
    # fb_ref:   (1, Nclass)         fc bias
    # out_ref:  (B, Nclass)         logits
    B, Hp, Wp, Cin = xpad_ref.shape
    H, W = Hp - 2, Wp - 2
    Cout = cb_ref.shape[-1]

    cw = cw_ref[...]  # (K, K, Cin, Cout), tiny — lives in a handful of vregs

    # Conv as 9 accumulating matmuls: each shifted (B*H*W, Cin) activation slab
    # hits the matching (Cin, Cout) weight slab on the MXU.  No im2col buffer.
    acc = jnp.zeros((B * H * W, Cout), jnp.float32)
    for di in range(K):
        for dj in range(K):
            xs = xpad_ref[:, di:di + H, dj:dj + W, :].reshape(B * H * W, Cin)
            acc = acc + jnp.dot(xs, cw[di, dj],
                                preferred_element_type=jnp.float32)

    feat = jnp.maximum(acc + cb_ref[...], 0.0)                 # bias + ReLU

    # Global average pool: cross-sublane reduction on the (otherwise idle) XLU.
    pooled = jnp.sum(feat.reshape(B, H * W, Cout), axis=1) * (1.0 / (H * W))

    logits = jnp.dot(pooled, fw_ref[...],
                     preferred_element_type=jnp.float32) + fb_ref[...]
    out_ref[...] = logits.astype(out_ref.dtype)


def prepare_params(conv_w, conv_b, fc_w, fc_b):
    """One-time parameter re-layout (hoisted out of the per-call path).

    conv_w: (Cout, Cin, K, K), conv_b: (Cout,), fc_w: (Nclass, Cout), fc_b: (Nclass,)
    """
    cw = jnp.transpose(conv_w, (2, 3, 1, 0)).astype(jnp.float32)  # (kh, kw, Cin, Cout)
    cb = conv_b.reshape(1, -1).astype(jnp.float32)
    fw = jnp.transpose(fc_w).astype(jnp.float32)                  # (Cout, Nclass)
    fb = fc_b.reshape(1, -1).astype(jnp.float32)
    return cw, cb, fw, fb


@jax.jit
def net_forward(x_nchw, cw, cb, fw, fb):
    B, C, H, W = x_nchw.shape
    Cout = cb.shape[-1]
    nclass = fb.shape[-1]

    # NCHW -> NHWC + zero-pad: one small HLO (~10 KB of activations into the
    # kernel) instead of a 73 KB materialized im2col matrix.
    x = jnp.transpose(x_nchw, (0, 2, 3, 1)).astype(jnp.float32)
    xpad = jnp.pad(x, ((0, 0), (1, 1), (1, 1), (0, 0)))

    flops = 2 * B * H * W * (K * K * C) * Cout + 2 * B * Cout * nclass
    bytes_accessed = 4 * (xpad.size + cw.size + cb.size + fw.size + fb.size
                          + B * nclass)

    vmem = pl.BlockSpec(memory_space=pltpu.MemorySpace.VMEM)
    return pl.pallas_call(
        net_kernel,
        out_shape=jax.ShapeDtypeStruct((B, nclass), jnp.float32),
        in_specs=[vmem] * 5,
        out_specs=vmem,
        cost_estimate=pl.CostEstimate(flops=flops, transcendentals=0,
                                      bytes_accessed=bytes_accessed),
        # No grid: single invocation; everything (<0.2 MiB) fits VMEM on
        # v5e/v6e/v7x with huge headroom, so no compiler_params overrides.
    )(xpad, cw, cb, fw, fb)


if __name__ == "__main__":
    B, Cin, H, W = 2, 4, 16, 16
    Cout, NCLASS = 8, 10

    key = jax.random.PRNGKey(0)
    kx, kcw, kcb, kfw, kfb = jax.random.split(key, 5)

    x = jax.random.normal(kx, (B, Cin, H, W), dtype=jnp.float32)
    conv_w = 0.1 * jax.random.normal(kcw, (Cout, Cin, K, K), dtype=jnp.float32)
    conv_b = 0.1 * jax.random.normal(kcb, (Cout,), dtype=jnp.float32)
    fc_w = 0.1 * jax.random.normal(kfw, (NCLASS, Cout), dtype=jnp.float32)
    fc_b = 0.1 * jax.random.normal(kfb, (NCLASS,), dtype=jnp.float32)

    params = prepare_params(conv_w, conv_b, fc_w, fc_b)   # hoisted, done once
    out = net_forward(x, *params)
    jax.block_until_ready(out)
    assert out.shape == (B, NCLASS) and out.dtype == jnp.float32

    # Pure-JAX reference check (conv via lax.conv + pool + linear)
    ref_feat = jax.lax.conv_general_dilated(
        x, conv_w, window_strides=(1, 1), padding=((1, 1), (1, 1)),
        dimension_numbers=("NCHW", "OIHW", "NCHW"))
    ref_feat = jnp.maximum(ref_feat + conv_b[None, :, None, None], 0.0)
    ref_pooled = jnp.mean(ref_feat, axis=(2, 3))           # (B, Cout)
    ref_out = ref_pooled @ fc_w.T + fc_b
    assert jnp.allclose(out, ref_out, atol=1e-4, rtol=1e-4)

    print("KERNEL_OK")
</pallas_src>

<mosaic_0001>
module attributes {stable_mosaic.version = 11 : i64} {
  func.func @net_kernel(%arg0: memref<2x18x18x4xf32, #tpu.memory_space<vmem>>, %arg1: memref<3x3x4x8xf32, #tpu.memory_space<vmem>>, %arg2: memref<1x8xf32, #tpu.memory_space<vmem>>, %arg3: memref<8x10xf32, #tpu.memory_space<vmem>>, %arg4: memref<1x10xf32, #tpu.memory_space<vmem>>, %arg5: memref<2x10xf32, #tpu.memory_space<vmem>>) attributes {dimension_semantics = [], scalar_prefetch = 0 : i64, scratch_operands = 0 : i64, tpu.core_type = #tpu.core_type<tc>} {
    %c0 = arith.constant 0 : index
    %c0_0 = arith.constant 0 : index
    %c0_1 = arith.constant 0 : index
    %c0_2 = arith.constant 0 : index
    %0 = vector.load %arg1[%c0, %c0_0, %c0_1, %c0_2] : memref<3x3x4x8xf32, #tpu.memory_space<vmem>>, vector<3x3x4x8xf32>
    %cst = arith.constant 0.000000e+00 : f32
    %1 = vector.broadcast %cst : f32 to vector<512x8xf32>
    %c0_3 = arith.constant 0 : index
    %c0_4 = arith.constant 0 : index
    %c0_5 = arith.constant 0 : index
    %c0_6 = arith.constant 0 : index
    %2 = vector.load %arg0[%c0_3, %c0_4, %c0_5, %c0_6] : memref<2x18x18x4xf32, #tpu.memory_space<vmem>>, vector<2x16x16x4xf32>
    %3 = vector.shape_cast %2 : vector<2x16x16x4xf32> to vector<512x4xf32>
    %4 = vector.extract_strided_slice %0 {offsets = [0, 0, 0, 0], sizes = [1, 1, 4, 8], strides = [1, 1, 1, 1]} : vector<3x3x4x8xf32> to vector<1x1x4x8xf32>
    %5 = vector.shape_cast %4 : vector<1x1x4x8xf32> to vector<4x8xf32>
    %cst_7 = arith.constant dense<0.000000e+00> : vector<512x8xf32>
    %6 = tpu.matmul %3, %5, %cst_7 {dimension_numbers = #tpu.dot_dimension_numbers<[1], [0], [0], [1], [0, 0, 1, 1], [], []>} : vector<512x4xf32>, vector<4x8xf32>, vector<512x8xf32> -> vector<512x8xf32>
    %7 = arith.addf %1, %6 : vector<512x8xf32>
    %c0_8 = arith.constant 0 : index
    %c0_9 = arith.constant 0 : index
    %c1 = arith.constant 1 : index
    %c0_10 = arith.constant 0 : index
    %8 = vector.load %arg0[%c0_8, %c0_9, %c1, %c0_10] : memref<2x18x18x4xf32, #tpu.memory_space<vmem>>, vector<2x16x16x4xf32>
    %9 = vector.shape_cast %8 : vector<2x16x16x4xf32> to vector<512x4xf32>
    %10 = vector.extract_strided_slice %0 {offsets = [0, 1, 0, 0], sizes = [1, 1, 4, 8], strides = [1, 1, 1, 1]} : vector<3x3x4x8xf32> to vector<1x1x4x8xf32>
    %11 = vector.shape_cast %10 : vector<1x1x4x8xf32> to vector<4x8xf32>
    %cst_11 = arith.constant dense<0.000000e+00> : vector<512x8xf32>
    %12 = tpu.matmul %9, %11, %cst_11 {dimension_numbers = #tpu.dot_dimension_numbers<[1], [0], [0], [1], [0, 0, 1, 1], [], []>} : vector<512x4xf32>, vector<4x8xf32>, vector<512x8xf32> -> vector<512x8xf32>
    %13 = arith.addf %7, %12 : vector<512x8xf32>
    %c0_12 = arith.constant 0 : index
    %c0_13 = arith.constant 0 : index
    %c2 = arith.constant 2 : index
    %c0_14 = arith.constant 0 : index
    %14 = vector.load %arg0[%c0_12, %c0_13, %c2, %c0_14] : memref<2x18x18x4xf32, #tpu.memory_space<vmem>>, vector<2x16x16x4xf32>
    %15 = vector.shape_cast %14 : vector<2x16x16x4xf32> to vector<512x4xf32>
    %16 = vector.extract_strided_slice %0 {offsets = [0, 2, 0, 0], sizes = [1, 1, 4, 8], strides = [1, 1, 1, 1]} : vector<3x3x4x8xf32> to vector<1x1x4x8xf32>
    %17 = vector.shape_cast %16 : vector<1x1x4x8xf32> to vector<4x8xf32>
    %cst_15 = arith.constant dense<0.000000e+00> : vector<512x8xf32>
    %18 = tpu.matmul %15, %17, %cst_15 {dimension_numbers = #tpu.dot_dimension_numbers<[1], [0], [0], [1], [0, 0, 1, 1], [], []>} : vector<512x4xf32>, vector<4x8xf32>, vector<512x8xf32> -> vector<512x8xf32>
    %19 = arith.addf %13, %18 : vector<512x8xf32>
    %c0_16 = arith.constant 0 : index
    %c1_17 = arith.constant 1 : index
    %c0_18 = arith.constant 0 : index
    %c0_19 = arith.constant 0 : index
    %20 = vector.load %arg0[%c0_16, %c1_17, %c0_18, %c0_19] : memref<2x18x18x4xf32, #tpu.memory_space<vmem>>, vector<2x16x16x4xf32>
    %21 = vector.shape_cast %20 : vector<2x16x16x4xf32> to vector<512x4xf32>
    %22 = vector.extract_strided_slice %0 {offsets = [1, 0, 0, 0], sizes = [1, 1, 4, 8], strides = [1, 1, 1, 1]} : vector<3x3x4x8xf32> to vector<1x1x4x8xf32>
    %23 = vector.shape_cast %22 : vector<1x1x4x8xf32> to vector<4x8xf32>
    %cst_20 = arith.constant dense<0.000000e+00> : vector<512x8xf32>
    %24 = tpu.matmul %21, %23, %cst_20 {dimension_numbers = #tpu.dot_dimension_numbers<[1], [0], [0], [1], [0, 0, 1, 1], [], []>} : vector<512x4xf32>, vector<4x8xf32>, vector<512x8xf32> -> vector<512x8xf32>
    %25 = arith.addf %19, %24 : vector<512x8xf32>
    %c0_21 = arith.constant 0 : index
    %c1_22 = arith.constant 1 : index
    %c1_23 = arith.constant 1 : index
    %c0_24 = arith.constant 0 : index
    %26 = vector.load %arg0[%c0_21, %c1_22, %c1_23, %c0_24] : memref<2x18x18x4xf32, #tpu.memory_space<vmem>>, vector<2x16x16x4xf32>
    %27 = vector.shape_cast %26 : vector<2x16x16x4xf32> to vector<512x4xf32>
    %28 = vector.extract_strided_slice %0 {offsets = [1, 1, 0, 0], sizes = [1, 1, 4, 8], strides = [1, 1, 1, 1]} : vector<3x3x4x8xf32> to vector<1x1x4x8xf32>
    %29 = vector.shape_cast %28 : vector<1x1x4x8xf32> to vector<4x8xf32>
    %cst_25 = arith.constant dense<0.000000e+00> : vector<512x8xf32>
    %30 = tpu.matmul %27, %29, %cst_25 {dimension_numbers = #tpu.dot_dimension_numbers<[1], [0], [0], [1], [0, 0, 1, 1], [], []>} : vector<512x4xf32>, vector<4x8xf32>, vector<512x8xf32> -> vector<512x8xf32>
    %31 = arith.addf %25, %30 : vector<512x8xf32>
    %c0_26 = arith.constant 0 : index
    %c1_27 = arith.constant 1 : index
    %c2_28 = arith.constant 2 : index
    %c0_29 = arith.constant 0 : index
    %32 = vector.load %arg0[%c0_26, %c1_27, %c2_28, %c0_29] : memref<2x18x18x4xf32, #tpu.memory_space<vmem>>, vector<2x16x16x4xf32>
    %33 = vector.shape_cast %32 : vector<2x16x16x4xf32> to vector<512x4xf32>
    %34 = vector.extract_strided_slice %0 {offsets = [1, 2, 0, 0], sizes = [1, 1, 4, 8], strides = [1, 1, 1, 1]} : vector<3x3x4x8xf32> to vector<1x1x4x8xf32>
    %35 = vector.shape_cast %34 : vector<1x1x4x8xf32> to vector<4x8xf32>
    %cst_30 = arith.constant dense<0.000000e+00> : vector<512x8xf32>
    %36 = tpu.matmul %33, %35, %cst_30 {dimension_numbers = #tpu.dot_dimension_numbers<[1], [0], [0], [1], [0, 0, 1, 1], [], []>} : vector<512x4xf32>, vector<4x8xf32>, vector<512x8xf32> -> vector<512x8xf32>
    %37 = arith.addf %31, %36 : vector<512x8xf32>
    %c0_31 = arith.constant 0 : index
    %c2_32 = arith.constant 2 : index
    %c0_33 = arith.constant 0 : index
    %c0_34 = arith.constant 0 : index
    %38 = vector.load %arg0[%c0_31, %c2_32, %c0_33, %c0_34] : memref<2x18x18x4xf32, #tpu.memory_space<vmem>>, vector<2x16x16x4xf32>
    %39 = vector.shape_cast %38 : vector<2x16x16x4xf32> to vector<512x4xf32>
    %40 = vector.extract_strided_slice %0 {offsets = [2, 0, 0, 0], sizes = [1, 1, 4, 8], strides = [1, 1, 1, 1]} : vector<3x3x4x8xf32> to vector<1x1x4x8xf32>
    %41 = vector.shape_cast %40 : vector<1x1x4x8xf32> to vector<4x8xf32>
    %cst_35 = arith.constant dense<0.000000e+00> : vector<512x8xf32>
    %42 = tpu.matmul %39, %41, %cst_35 {dimension_numbers = #tpu.dot_dimension_numbers<[1], [0], [0], [1], [0, 0, 1, 1], [], []>} : vector<512x4xf32>, vector<4x8xf32>, vector<512x8xf32> -> vector<512x8xf32>
    %43 = arith.addf %37, %42 : vector<512x8xf32>
    %c0_36 = arith.constant 0 : index
    %c2_37 = arith.constant 2 : index
    %c1_38 = arith.constant 1 : index
    %c0_39 = arith.constant 0 : index
    %44 = vector.load %arg0[%c0_36, %c2_37, %c1_38, %c0_39] : memref<2x18x18x4xf32, #tpu.memory_space<vmem>>, vector<2x16x16x4xf32>
    %45 = vector.shape_cast %44 : vector<2x16x16x4xf32> to vector<512x4xf32>
    %46 = vector.extract_strided_slice %0 {offsets = [2, 1, 0, 0], sizes = [1, 1, 4, 8], strides = [1, 1, 1, 1]} : vector<3x3x4x8xf32> to vector<1x1x4x8xf32>
    %47 = vector.shape_cast %46 : vector<1x1x4x8xf32> to vector<4x8xf32>
    %cst_40 = arith.constant dense<0.000000e+00> : vector<512x8xf32>
    %48 = tpu.matmul %45, %47, %cst_40 {dimension_numbers = #tpu.dot_dimension_numbers<[1], [0], [0], [1], [0, 0, 1, 1], [], []>} : vector<512x4xf32>, vector<4x8xf32>, vector<512x8xf32> -> vector<512x8xf32>
    %49 = arith.addf %43, %48 : vector<512x8xf32>
    %c0_41 = arith.constant 0 : index
    %c2_42 = arith.constant 2 : index
    %c2_43 = arith.constant 2 : index
    %c0_44 = arith.constant 0 : index
    %50 = vector.load %arg0[%c0_41, %c2_42, %c2_43, %c0_44] : memref<2x18x18x4xf32, #tpu.memory_space<vmem>>, vector<2x16x16x4xf32>
    %51 = vector.shape_cast %50 : vector<2x16x16x4xf32> to vector<512x4xf32>
    %52 = vector.extract_strided_slice %0 {offsets = [2, 2, 0, 0], sizes = [1, 1, 4, 8], strides = [1, 1, 1, 1]} : vector<3x3x4x8xf32> to vector<1x1x4x8xf32>
    %53 = vector.shape_cast %52 : vector<1x1x4x8xf32> to vector<4x8xf32>
    %cst_45 = arith.constant dense<0.000000e+00> : vector<512x8xf32>
    %54 = tpu.matmul %51, %53, %cst_45 {dimension_numbers = #tpu.dot_dimension_numbers<[1], [0], [0], [1], [0, 0, 1, 1], [], []>} : vector<512x4xf32>, vector<4x8xf32>, vector<512x8xf32> -> vector<512x8xf32>
    %55 = arith.addf %49, %54 : vector<512x8xf32>
    %c0_46 = arith.constant 0 : index
    %c0_47 = arith.constant 0 : index
    %56 = vector.load %arg2[%c0_46, %c0_47] : memref<1x8xf32, #tpu.memory_space<vmem>>, vector<1x8xf32>
    %57 = vector.broadcast %56 : vector<1x8xf32> to vector<512x8xf32>
    %58 = arith.addf %55, %57 : vector<512x8xf32>
    %cst_48 = arith.constant 0.000000e+00 : f32
    %59 = vector.broadcast %cst_48 : f32 to vector<512x8xf32>
    %60 = arith.maximumf %58, %59 : vector<512x8xf32>
    %61 = vector.shape_cast %60 : vector<512x8xf32> to vector<2x256x8xf32>
    %cst_49 = arith.constant dense<0.000000e+00> : vector<2x8xf32>
    %62 = vector.multi_reduction <add>, %61, %cst_49 [1] : vector<2x256x8xf32> to vector<2x8xf32>
    %cst_50 = arith.constant 3.906250e-03 : f32
    %63 = vector.broadcast %cst_50 : f32 to vector<2x8xf32>
    %64 = arith.mulf %62, %63 : vector<2x8xf32>
    %c0_51 = arith.constant 0 : index
    %c0_52 = arith.constant 0 : index
    %65 = vector.load %arg3[%c0_51, %c0_52] : memref<8x10xf32, #tpu.memory_space<vmem>>, vector<8x10xf32>
    %cst_53 = arith.constant dense<0.000000e+00> : vector<2x10xf32>
    %66 = tpu.matmul %64, %65, %cst_53 {dimension_numbers = #tpu.dot_dimension_numbers<[1], [0], [0], [1], [0, 0, 1, 1], [], []>} : vector<2x8xf32>, vector<8x10xf32>, vector<2x10xf32> -> vector<2x10xf32>
    %c0_54 = arith.constant 0 : index
    %c0_55 = arith.constant 0 : index
    %67 = vector.load %arg4[%c0_54, %c0_55] : memref<1x10xf32, #tpu.memory_space<vmem>>, vector<1x10xf32>
    %68 = vector.broadcast %67 : vector<1x10xf32> to vector<2x10xf32>
    %69 = arith.addf %66, %68 : vector<2x10xf32>
    %c0_56 = arith.constant 0 : index
    %c0_57 = arith.constant 0 : index
    %70 = vector.load %arg5[%c0_56, %c0_57] : memref<2x10xf32, #tpu.memory_space<vmem>>, vector<2x10xf32>
    tpu.vector_store %arg5[%c0_56, %c0_57], %69 {strides = array<i32>} : memref<2x10xf32, #tpu.memory_space<vmem>>, vector<2x10xf32>,
    return
  }
}

</mosaic_0001>

<bundles_post_ra>
// kernel: net_forward.1
= control target key start
LH: loop header
LB: loop body
LE: loop exit
PB: predicated region body
PF: predicated region fallthrough
CT: control target
= control target key end

     0   :  { %vm351_vm0 = vcmask 1043456   ;;  %vm158_vm1 = vcmask 31744   ;;  %s12291_s0 = inlined_call_operand.vmem [shape: f32[2,18,18,4], index: 0, kind: input, shape index: {}]   ;;  %s12292_s1 = inlined_call_operand.vmem [shape: f32[3,3,4,8], index: 1, kind: input, shape index: {}]   ;;  %s12293_s2 = inlined_call_operand.vmem [shape: f32[1,8], index: 2, kind: input, shape index: {}]   ;;  %s12294_s3 = inlined_call_operand.vmem [shape: f32[8,10], index: 3, kind: input, shape index: {}]   ;;  %s12295_s4 = inlined_call_operand.vmem [shape: f32[1,10], index: 4, kind: input, shape index: {}]   ;;  %s12296_s5 = inlined_call_operand.hbm [shape: f32[2,10], index: 5, kind: output, shape index: {}]  }
   0x1   :  { %v22_v0 = vld [vmem:[%s12292_s1 + $0x4] sm:$0xf]  ;;  %v9681_v1 = vld [vmem:[%s12292_s1 + $0x10] sm:$0xf]  ;;  %v6978_v3 = vld [vmem:[%s12291_s0 + $0x19] sm:$0xff] }
   0x2   :  { %v94_v2 = vld [vmem:[%s12291_s0 + $0x1] sm:$0xff]  ;;  %8213 = vmatprep.subr.msk.mxu1 %vm351_vm0, %v22_v0  ;;  %8605 = vmatprep.subr.msk.mxu0 %vm351_vm0, %v9681_v1  ;;  %v95_v4 = vld [vmem:[%s12291_s0 + $0x9] sm:$0xff]  ;;  %v26_v6 = vld [vmem:[%s12292_s1 + $0x14] sm:$0xf] }
   0x3   :  { %v6979_v5 = vld [vmem:[%s12291_s0 + $0x21] sm:$0xff]  ;;  %8214 = vmatpush3.msk.msra.mxu1 %vm351_vm0, %v22_v0  ;;  %8215 = vmatprep.mubr.msk.f32.mxu1 %vm158_vm1, %v94_v2  ;;  %v6980_v7 = vld [vmem:[%s12291_s0 + $0x31] sm:$0xff]  ;;  %v6981_v9 = vld [vmem:[%s12291_s0 + $0x39] sm:$0xff] }
   0x4   :  { %8606 = vmatpush3.msk.msra.mxu0 %vm351_vm0, %v9681_v1  ;;  %8607 = vmatprep.mubr.msk.f32.mxu0 %vm158_vm1, %v6978_v3  ;;  %v21_v8 = vld [vmem:[%s12292_s1] sm:$0xf]  ;;  %v6982_v10 = vld [vmem:[%s12291_s0 + $0x49] sm:$0xff]  ;;  %v6983_v11 = vld [vmem:[%s12291_s0 + $0x51] sm:$0xff] }
   0x5   :  { %8216 = vmatmul.mubr.msk.f32.vlgmr.msra.gmra.mrb[0].mxu1 %vm158_vm1, %v95_v4  ;;  %8608 = vmatmul.mubr.msk.f32.vlgmr.msra.gmra.mrb[0].mxu0 %vm158_vm1, %v6979_v5  ;;  %v6984_v12 = vld [vmem:[%s12291_s0 + $0x61] sm:$0xff]  ;;  %v6985_v13 = vld [vmem:[%s12291_s0 + $0x69] sm:$0xff]  ;;  %v6986_v14 = vld [vmem:[%s12291_s0 + $0x79] sm:$0xff] }
   0x6   :  { %8703 = vmatprep.subr.msk.mxu0 %vm351_vm0, %v26_v6  ;;  %8218 = vmatprep.mubr.msk.f32.mxu1 %vm158_vm1, %v6978_v3  ;;  %v9749_v15 = vld [vmem:[%s12292_s1 + $0x18] sm:$0xf]  ;;  %v6987_v16 = vld [vmem:[%s12291_s0 + $0x81] sm:$0xff]  ;;  %v6990_v19 = vld [vmem:[%s12291_s0 + $0xa9] sm:$0xff] }
   0x7   :  { %8704 = vmatpush3.msk.msra.mxu0 %vm351_vm0, %v26_v6  ;;  %8610 = vmatprep.mubr.msk.f32.mxu0 %vm158_vm1, %v6980_v7  ;;  %v6988_v17 = vld [vmem:[%s12291_s0 + $0x91] sm:$0xff]  ;;  %v6989_v18 = vld [vmem:[%s12291_s0 + $0x99] sm:$0xff]  ;;  %v6992_v21 = vld [vmem:[%s12291_s0 + $0xc1] sm:$0xff] }
   0x8   :  { %8311 = vmatprep.subr.msk.mxu1 %vm351_vm0, %v21_v8  ;;  %8801 = vmatprep.subr.msk.mxu0 %vm351_vm0, %v9749_v15  ;;  %v6991_v20 = vld [vmem:[%s12291_s0 + $0xb1] sm:$0xff]  ;;  %v6993_v22 = vld [vmem:[%s12291_s0 + $0xc9] sm:$0xff]  ;;  %v6994_v23 = vld [vmem:[%s12291_s0 + $0xd9] sm:$0xff] }
   0x9   :  { %8219 = vmatmul.mubr.msk.f32.gmra.mrb[2].mxu1 %vm158_vm1, %v6979_v5  ;;  %8611 = vmatmul.mubr.msk.f32.gmra.mrb[2].mxu0 %vm158_vm1, %v6981_v9  ;;  %v6995_v24 = vld [vmem:[%s12291_s0 + $0xe1] sm:$0xff]  ;;  %v6996_v25 = vld [vmem:[%s12291_s0 + $0xf1] sm:$0xff]  ;;  %v6997_v26 = vld [vmem:[%s12291_s0 + $0xf9] sm:$0xff] }
   0xa   :  { %8221 = vmatprep.mubr.msk.f32.mxu1 %vm158_vm1, %v6980_v7  ;;  %8613 = vmatprep.mubr.msk.f32.mxu0 %vm158_vm1, %v6982_v10  ;;  %v9813_v27 = vld [vmem:[%s12292_s1 + $0x8] sm:$0xf]  ;;  %v6999_v29 = vld [vmem:[%s12291_s0 + $0x111] sm:$0xff]  ;;  %v7002_v32 = vld [vmem:[%s12291_s0 + $0x139] sm:$0xff] }
   0xb   :  { %8312 = vmatpush3.msk.msra.mxu1 %vm351_vm0, %v21_v8  ;;  %v6998_v28 = vld [vmem:[%s12291_s0 + $0x109] sm:$0xff]  ;;  %v7000_v30 = vld [vmem:[%s12291_s0 + $0x121] sm:$0xff]  ;;  %v7004_v34 = vld [vmem:[%s12291_s0 + $0x151] sm:$0xff] }
   0xc   :  { %8409 = vmatprep.subr.msk.mxu1 %vm351_vm0, %v9813_v27  ;;  %v7001_v31 = vld [vmem:[%s12291_s0 + $0x129] sm:$0xff]  ;;  %v7003_v33 = vld [vmem:[%s12291_s0 + $0x141] sm:$0xff] }
   0xd   :  { %8222 = vmatmul.mubr.msk.f32.gmra.mrb[4].mxu1 %vm158_vm1, %v6981_v9  ;;  %8614 = vmatmul.mubr.msk.f32.gmra.mrb[4].mxu0 %vm158_vm1, %v6983_v11 }
   0xe   :  { %8224 = vmatprep.mubr.msk.f32.mxu1 %vm158_vm1, %v6982_v10  ;;  %8616 = vmatprep.mubr.msk.f32.mxu0 %vm158_vm1, %v6984_v12 }
  0x11   :  { %8225 = vmatmul.mubr.msk.f32.gmra.mrb[6].mxu1 %vm158_vm1, %v6983_v11  ;;  %8617 = vmatmul.mubr.msk.f32.gmra.mrb[6].mxu0 %vm158_vm1, %v6985_v13 }
  0x12   :  { %8227 = vmatprep.mubr.msk.f32.mxu1 %vm158_vm1, %v6984_v12  ;;  %8619 = vmatprep.mubr.msk.f32.mxu0 %vm158_vm1, %v6986_v14 }
  0x15   :  { %8228 = vmatmul.mubr.msk.f32.gmra.mrb[8].mxu1 %vm158_vm1, %v6985_v13  ;;  %8620 = vmatmul.mubr.msk.f32.gmra.mrb[8].mxu0 %vm158_vm1, %v6987_v16 }
  0x16   :  { %8230 = vmatprep.mubr.msk.f32.mxu1 %vm158_vm1, %v6986_v14  ;;  %8622 = vmatprep.mubr.msk.f32.mxu0 %vm158_vm1, %v6988_v17 }
  0x19   :  { %8231 = vmatmul.mubr.msk.f32.gmra.mrb[10].mxu1 %vm158_vm1, %v6987_v16  ;;  %8623 = vmatmul.mubr.msk.f32.gmra.mrb[10].mxu0 %vm158_vm1, %v6989_v18 }
  0x1a   :  { %8233 = vmatprep.mubr.msk.f32.mxu1 %vm158_vm1, %v6988_v17  ;;  %8625 = vmatprep.mubr.msk.f32.mxu0 %vm158_vm1, %v6990_v19 }
  0x1d   :  { %8234 = vmatmul.mubr.msk.f32.gmra.mrb[12].mxu1 %vm158_vm1, %v6989_v18  ;;  %8626 = vmatmul.mubr.msk.f32.gmra.mrb[12].mxu0 %vm158_vm1, %v6991_v20 }
  0x1e   :  { %8236 = vmatprep.mubr.msk.f32.mxu1 %vm158_vm1, %v6990_v19  ;;  %8628 = vmatprep.mubr.msk.f32.mxu0 %vm158_vm1, %v6992_v21 }
  0x21   :  { %8237 = vmatmul.mubr.msk.f32.gmra.mrb[14].mxu1 %vm158_vm1, %v6991_v20  ;;  %8629 = vmatmul.mubr.msk.f32.gmra.mrb[14].mxu0 %vm158_vm1, %v6993_v22 }
  0x22   :  { %8239 = vmatprep.mubr.msk.f32.mxu1 %vm158_vm1, %v6992_v21  ;;  %8631 = vmatprep.mubr.msk.f32.mxu0 %vm158_vm1, %v6994_v23 }
  0x25   :  { %8240 = vmatmul.mubr.msk.f32.gmra.mrb[16].mxu1 %vm158_vm1, %v6993_v22  ;;  %8632 = vmatmul.mubr.msk.f32.gmra.mrb[16].mxu0 %vm158_vm1, %v6995_v24 }
  0x26   :  { %8242 = vmatprep.mubr.msk.f32.mxu1 %vm158_vm1, %v6994_v23  ;;  %8634 = vmatprep.mubr.msk.f32.mxu0 %vm158_vm1, %v6996_v25 }
  0x29   :  { %8243 = vmatmul.mubr.msk.f32.gmra.mrb[18].mxu1 %vm158_vm1, %v6995_v24  ;;  %8635 = vmatmul.mubr.msk.f32.gmra.mrb[18].mxu0 %vm158_vm1, %v6997_v26 }
  0x2a   :  { %8245 = vmatprep.mubr.msk.f32.mxu1 %vm158_vm1, %v6996_v25  ;;  %8637 = vmatprep.mubr.msk.f32.mxu0 %vm158_vm1, %v6998_v28 }
  0x2d   :  { %8246 = vmatmul.mubr.msk.f32.gmra.mrb[20].mxu1 %vm158_vm1, %v6997_v26  ;;  %8638 = vmatmul.mubr.msk.f32.gmra.mrb[20].mxu0 %vm158_vm1, %v6999_v29 }
  0x2e   :  { %8248 = vmatprep.mubr.msk.f32.mxu1 %vm158_vm1, %v6998_v28  ;;  %8640 = vmatprep.mubr.msk.f32.mxu0 %vm158_vm1, %v7000_v30 }
  0x31   :  { %8249 = vmatmul.mubr.msk.f32.gmra.mrb[22].mxu1 %vm158_vm1, %v6999_v29  ;;  %8641 = vmatmul.mubr.msk.f32.gmra.mrb[22].mxu0 %vm158_vm1, %v7001_v31 }
  0x32   :  { %8251 = vmatprep.mubr.msk.f32.mxu1 %vm158_vm1, %v7000_v30  ;;  %8643 = vmatprep.mubr.msk.f32.mxu0 %vm158_vm1, %v7002_v32 }
  0x33   :  { %10 = vsyncpa [#allocation3], 0  ;;  %v7005_v35 = vld [vmem:[%s12291_s0 + $0x159] sm:$0xff]  ;;  %v7006_v36 = vld [vmem:[%s12291_s0 + $0x169] sm:$0xff]  ;;  %vm6413_vm2 = vcmask 64512   ;;  %vm9643_vm3 = vmmov 0  }
  0x34   :  { %v7007_v37 = vld [vmem:[%s12291_s0 + $0x171] sm:$0xff]  ;;  %v7008_v38 = vld [vmem:[%s12291_s0 + $0x181] sm:$0xff]  ;;  %v7009_v39 = vld [vmem:[%s12291_s0 + $0x189] sm:$0xff]  ;;  %vm6564_vm4 = vcmask 1041409   ;;  %s9644_s13 = smov [#allocation2]   ;;  %vm6638_vm5 = vcmask 74752  }
  0x35   :  { %8252 = vmatmul.mubr.msk.f32.gmra.mrb[24].mxu1 %vm158_vm1, %v7001_v31  ;;  %8644 = vmatmul.mubr.msk.f32.gmra.mrb[24].mxu0 %vm158_vm1, %v7003_v33  ;;  %v126_v40 = vld [vmem:[%s12291_s0 + $0x1b1] sm:$0xff]  ;;  %v7010_v41 = vld [vmem:[%s12291_s0 + $0x1c9] sm:$0xff]  ;;  %v127_v42 = vld [vmem:[%s12291_s0 + $0x1b9] sm:$0xff]  ;;  %s6646_s14 = sshll.u32 %s9644_s13, 4  ;;  %s6647_s14 = int_to_ptr.vmem [resolvable:$true] %s6646_s14 }
  0x36   :  { %8254 = vmatprep.mubr.msk.f32.mxu1 %vm158_vm1, %v7002_v32  ;;  %8646 = vmatprep.mubr.msk.f32.mxu0 %vm158_vm1, %v7004_v34  ;;  %v7011_v43 = vld [vmem:[%s12291_s0 + $0x1d1] sm:$0xff]  ;;  %v9896_v44 = vld [vmem:[%s12291_s0 + $0x1a] sm:$0xff]  ;;  %v9906_v45 = vld [vmem:[%s12291_s0 + $0x22] sm:$0xff]  ;;  %s9618_s15 = scalar_lea.vmem %s6647_s14, 32  ;;  %p9623_p1 = scmp.lt.s32.totalorder %s6647_s14, %s6647_s14 }
  0x37   :  { %v130_v46 = vld [vmem:[%s12291_s0 + $0x1e1] sm:$0xff]  ;;  %v9914_v47 = vld [vmem:[%s12291_s0 + $0x32] sm:$0xff]  ;;  %v9922_v48 = vld [vmem:[%s12292_s1 + $0x1c] sm:$0xf]  ;;  %p9619_p0 = scmp.ne.s32.totalorder %s6647_s14, %s9618_s15  ;;  %p9624_p2 = scmp.lt.s32.totalorder %s9618_s15, %s9618_s15 }
  0x38   :  { %v131_v49 = vld [vmem:[%s12291_s0 + $0x1e9] sm:$0xff]  ;;  %v9933_v50 = vld [vmem:[%s12291_s0 + $0x3a] sm:$0xff]  ;;  %v9959_v54 = vld [vmem:[%s12291_s0 + $0x52] sm:$0xff] }
  0x39   :  { %8255 = vmatmul.mubr.msk.f32.gmra.mrb[26].mxu1 %vm158_vm1, %v7003_v33  ;;  %8647 = vmatmul.mubr.msk.f32.gmra.mrb[26].mxu0 %vm158_vm1, %v7005_v35  ;;  %v132_v51 = vld [vmem:[%s12291_s0 + $0x1f9] sm:$0xff]  ;;  %v9943_v52 = vld [vmem:[%s12291_s0 + $0x4a] sm:$0xff]  ;;  %v133_v53 = vld [vmem:[%s12291_s0 + $0x201] sm:$0xff]  ;;  %p9625_p3 = por %p9624_p2, %p9623_p1 }
  0x3a   :  { %8257 = vmatprep.mubr.msk.f32.mxu1 %vm158_vm1, %v7004_v34  ;;  %8649 = vmatprep.mubr.msk.f32.mxu0 %vm158_vm1, %v7006_v36  ;;  %v134_v55 = vld [vmem:[%s12291_s0 + $0x211] sm:$0xff]  ;;  %v9967_v56 = vld [vmem:[%s12291_s0 + $0x62] sm:$0xff]  ;;  %v135_v57 = vld [vmem:[%s12291_s0 + $0x219] sm:$0xff] }
  0x3b   :  { %v9981_v58 = vld [vmem:[%s12291_s0 + $0x6a] sm:$0xff]  ;;  %v9989_v60 = vld [vmem:[%s12291_s0 + $0x7a] sm:$0xff]  ;;  %v10003_v62 = vld [vmem:[%s12291_s0 + $0x82] sm:$0xff]  ;;  %p9626_p4 = pnand %p9625_p3, %p9619_p0 }
  0x3c   :  { %v136_v59 = vld [vmem:[%s12291_s0 + $0x229] sm:$0xff]  ;;  %v137_v61 = vld [vmem:[%s12291_s0 + $0x231] sm:$0xff]  ;;  %v138_v63 = vld [vmem:[%s12291_s0 + $0x241] sm:$0xff] }
  0x3d   :  { %8258 = vmatmul.mubr.msk.f32.gmra.mrb[28].mxu1 %vm158_vm1, %v7005_v35  ;;  %8650 = vmatmul.mubr.msk.f32.gmra.mrb[28].mxu0 %vm158_vm1, %v7007_v37  ;;  %v10011_v0 = vld [vmem:[%s12291_s0 + $0x92] sm:$0xff]  ;;  %v139_v2 = vld [vmem:[%s12291_s0 + $0x249] sm:$0xff]  ;;  %v10025_v3 = vld [vmem:[%s12291_s0 + $0x9a] sm:$0xff] }
  0x3e   :  { %8260 = vmatprep.mubr.msk.f32.mxu1 %vm158_vm1, %v7006_v36  ;;  %8652 = vmatprep.mubr.msk.f32.mxu0 %vm158_vm1, %v7008_v38  ;;  %v140_v4 = vld [vmem:[%s12291_s0 + $0x259] sm:$0xff]  ;;  %v10033_v5 = vld [vmem:[%s12291_s0 + $0xaa] sm:$0xff]  ;;  %v141_v6 = vld [vmem:[%s12291_s0 + $0x261] sm:$0xff] }
  0x3f   :  { %v10047_v7 = vld [vmem:[%s12291_s0 + $0xb2] sm:$0xff]  ;;  %v10055_v9 = vld [vmem:[%s12291_s0 + $0xc2] sm:$0xff]  ;;  %v10069_v11 = vld [vmem:[%s12291_s0 + $0xca] sm:$0xff] }
  0x40   :  { %v142_v8 = vld [vmem:[%s12291_s0 + $0x271] sm:$0xff]  ;;  %v143_v10 = vld [vmem:[%s12291_s0 + $0x279] sm:$0xff]  ;;  %v144_v12 = vld [vmem:[%s12291_s0 + $0x289] sm:$0xff] }
  0x41   :  { %8261 = vmatmul.mubr.msk.f32.gmra.mrb[30].mxu1 %vm158_vm1, %v7007_v37  ;;  %8653 = vmatmul.mubr.msk.f32.gmra.mrb[30].mxu0 %vm158_vm1, %v7009_v39  ;;  %v10077_v13 = vld [vmem:[%s12291_s0 + $0xda] sm:$0xff]  ;;  %v145_v14 = vld [vmem:[%s12291_s0 + $0x291] sm:$0xff]  ;;  %v147_v18 = vld [vmem:[%s12291_s0 + $0x2a9] sm:$0xff] }
  0x42   :  { %8263 = vmatprep.mubr.msk.f32.mxu1 %vm158_vm1, %v126_v40  ;;  %8655 = vmatprep.mubr.msk.f32.mxu0 %vm158_vm1, %v7010_v41  ;;  %v146_v16 = vld [vmem:[%s12291_s0 + $0x2a1] sm:$0xff]  ;;  %v10099_v17 = vld [vmem:[%s12291_s0 + $0xf2] sm:$0xff]  ;;  %v10121_v21 = vld [vmem:[%s12291_s0 + $0x10a] sm:$0xff] }
  0x43   :  { %v10113_v19 = vld [vmem:[%s12291_s0 + $0xfa] sm:$0xff]  ;;  %v10135_v23 = vld [vmem:[%s12291_s0 + $0x112] sm:$0xff]  ;;  %v10143_v25 = vld [vmem:[%s12291_s0 + $0x122] sm:$0xff] }
  0x44   :  { %v148_v20 = vld [vmem:[%s12291_s0 + $0x2b9] sm:$0xff]  ;;  %v149_v22 = vld [vmem:[%s12291_s0 + $0x2c1] sm:$0xff]  ;;  %v150_v24 = vld [vmem:[%s12291_s0 + $0x2d1] sm:$0xff] }
  0x45   :  { %8264 = vmatmul.mubr.msk.f32.gmra.mrb[32].mxu1 %vm158_vm1, %v127_v42  ;;  %8656 = vmatmul.mubr.msk.f32.gmra.mrb[32].mxu0 %vm158_vm1, %v7011_v43  ;;  %v151_v26 = vld [vmem:[%s12291_s0 + $0x2d9] sm:$0xff]  ;;  %v10157_v28 = vld [vmem:[%s12291_s0 + $0x12a] sm:$0xff]  ;;  %v10179_v32 = vld [vmem:[%s12291_s0 + $0x142] sm:$0xff] }
  0x46   :  { %8266 = vmatprep.mubr.msk.f32.mxu1 %vm158_vm1, %v7010_v41  ;;  %8705 = vmatprep.mubr.msk.f32.mxu0 %vm158_vm1, %v9896_v44  ;;  %v152_v29 = vld [vmem:[%s12291_s0 + $0x2e9] sm:$0xff]  ;;  %v10165_v30 = vld [vmem:[%s12291_s0 + $0x13a] sm:$0xff]  ;;  %v153_v31 = vld [vmem:[%s12291_s0 + $0x2f1] sm:$0xff] }
  0x47   :  { %v154_v33 = vld [vmem:[%s12291_s0 + $0x301] sm:$0xff]  ;;  %v10187_v34 = vld [vmem:[%s12291_s0 + $0x152] sm:$0xff]  ;;  %v155_v35 = vld [vmem:[%s12291_s0 + $0x309] sm:$0xff] }
  0x48   :  { %v10201_v36 = vld [vmem:[%s12291_s0 + $0x15a] sm:$0xff]  ;;  %v10209_v38 = vld [vmem:[%s12291_s0 + $0x16a] sm:$0xff]  ;;  %v10223_v40 = vld [vmem:[%s12291_s0 + $0x172] sm:$0xff] }
  0x49   :  { %8267 = vmatmul.mubr.msk.f32.gmra.mrb[34].mxu1 %vm158_vm1, %v7011_v43  ;;  %8706 = vmatmul.mubr.msk.f32.vlgmr.msra.gmra.mrb[0].mxu0 %vm158_vm1, %v9906_v45  ;;  %12332 = vst [vmem:[#allocation5_spill] sm:$0xff] %v10201_v36  ;;  %v156_v37 = vld [vmem:[%s12291_s0 + $0x319] sm:$0xff]  ;;  %12333 = vst [vmem:[#allocation6_spill] sm:$0xff] %v10209_v38  ;;  %v157_v39 = vld [vmem:[%s12291_s0 + $0x321] sm:$0xff] }
  0x4a   :  { %8802 = vmatpush3.msk.msra.mxu0 %vm351_vm0, %v9749_v15  ;;  %8269 = vmatprep.mubr.msk.f32.mxu1 %vm158_vm1, %v130_v46  ;;  %v10091_v15 = vld [vmem:[%s12291_s0 + $0xe2] sm:$0xff]  ;;  %12334 = vst [vmem:[#allocation7_spill] sm:$0xff] %v10223_v40  ;;  %v7138_v46 = vld [vmem:[%s12291_s0 + $0x18a] sm:$0xff] }
  0x4b   :  { %8708 = vmatprep.mubr.msk.f32.mxu0 %vm158_vm1, %v9914_v47  ;;  %8899 = vmatprep.subr.msk.mxu0 %vm351_vm0, %v9922_v48  ;;  %v30_v41 = vld [vmem:[%s12291_s0] sm:$0xff]  ;;  %v31_v43 = vld [vmem:[%s12291_s0 + $0x8] sm:$0xff] }
  0x4c   :  { %v7137_v42 = vld [vmem:[%s12291_s0 + $0x182] sm:$0xff] }
  0x4d   :  { %8270 = vmatmul.mubr.msk.f32.gmra.mrb[36].mxu1 %vm158_vm1, %v131_v49  ;;  %8709 = vmatmul.mubr.msk.f32.gmra.mrb[2].mxu0 %vm158_vm1, %v9933_v50  ;;  %v32_v49 = vld [vmem:[%s12291_s0 + $0x18] sm:$0xff] }
  0x4e   :  { %8272 = vmatprep.mubr.msk.f32.mxu1 %vm158_vm1, %v132_v51  ;;  %8711 = vmatprep.mubr.msk.f32.mxu0 %vm158_vm1, %v9943_v52  ;;  %v10248_v51 = vld [vmem:[%s12291_s0 + $0x1ca] sm:$0xff] }
  0x4f   :  { %12335 = vst [vmem:[#allocation8_spill] sm:$0xff] %v10248_v51 }
  0x51   :  { %8273 = vmatmul.mubr.msk.f32.gmra.mrb[38].mxu1 %vm158_vm1, %v133_v53  ;;  %8712 = vmatmul.mubr.msk.f32.gmra.mrb[4].mxu0 %vm158_vm1, %v9959_v54  ;;  %v33_v53 = vld [vmem:[%s12291_s0 + $0x20] sm:$0xff] }
  0x52   :  { %8275 = vmatprep.mubr.msk.f32.mxu1 %vm158_vm1, %v134_v55  ;;  %8714 = vmatprep.mubr.msk.f32.mxu0 %vm158_vm1, %v9967_v56  ;;  %v10261_v55 = vld [vmem:[%s12291_s0 + $0x1d2] sm:$0xff] }
  0x53   :  { %12336 = vst [vmem:[#allocation9_spill] sm:$0xff] %v10261_v55 }
  0x55   :  { %8276 = vmatmul.mubr.msk.f32.gmra.mrb[40].mxu1 %vm158_vm1, %v135_v57  ;;  %8715 = vmatmul.mubr.msk.f32.gmra.mrb[6].mxu0 %vm158_vm1, %v9981_v58  ;;  %v10266_v57 = vld [vmem:[%s12291_s0 + $0x30] sm:$0xff] }
  0x56   :  { %8278 = vmatprep.mubr.msk.f32.mxu1 %vm158_vm1, %v136_v59  ;;  %8717 = vmatprep.mubr.msk.f32.mxu0 %vm158_vm1, %v9989_v60  ;;  %v10271_v59 = vld [vmem:[%s12291_s0 + $0x1e2] sm:$0xff] }
  0x57   :  { %12337 = vst [vmem:[#allocation10_spill] sm:$0xff] %v10271_v59 }
  0x59   :  { %8279 = vmatmul.mubr.msk.f32.gmra.mrb[42].mxu1 %vm158_vm1, %v137_v61  ;;  %8718 = vmatmul.mubr.msk.f32.gmra.mrb[8].mxu0 %vm158_vm1, %v10003_v62  ;;  %v10285_v61 = vld [vmem:[%s12291_s0 + $0x38] sm:$0xff] }
  0x5a   :  { %8281 = vmatprep.mubr.msk.f32.mxu1 %vm158_vm1, %v138_v63  ;;  %8720 = vmatprep.mubr.msk.f32.mxu0 %vm158_vm1, %v10011_v0  ;;  %v10295_v63 = vld [vmem:[%s12291_s0 + $0x48] sm:$0xff] }
  0x5d   :  { %8282 = vmatmul.mubr.msk.f32.gmra.mrb[44].mxu1 %vm158_vm1, %v139_v2  ;;  %8721 = vmatmul.mubr.msk.f32.gmra.mrb[10].mxu0 %vm158_vm1, %v10025_v3  ;;  %v10300_v2 = vld [vmem:[%s12291_s0 + $0x1fa] sm:$0xff] }
  0x5e   :  { %8284 = vmatprep.mubr.msk.f32.mxu1 %vm158_vm1, %v140_v4  ;;  %8723 = vmatprep.mubr.msk.f32.mxu0 %vm158_vm1, %v10033_v5  ;;  %12339 = vst [vmem:[#allocation12_spill] sm:$0xff] %v10300_v2  ;;  %v10309_v4 = vld [vmem:[%s12292_s1 + $0xc] sm:$0xf] }
  0x61   :  { %8285 = vmatmul.mubr.msk.f32.gmra.mrb[46].mxu1 %vm158_vm1, %v141_v6  ;;  %8724 = vmatmul.mubr.msk.f32.gmra.mrb[12].mxu0 %vm158_vm1, %v10047_v7  ;;  %v10318_v6 = vld [vmem:[%s12291_s0 + $0x50] sm:$0xff] }
  0x62   :  { %8287 = vmatprep.mubr.msk.f32.mxu1 %vm158_vm1, %v142_v8  ;;  %8726 = vmatprep.mubr.msk.f32.mxu0 %vm158_vm1, %v10055_v9  ;;  %v10323_v8 = vld [vmem:[%s12291_s0 + $0x202] sm:$0xff] }
  0x63   :  { %12340 = vst [vmem:[#allocation13_spill] sm:$0xff] %v10323_v8 }
  0x65   :  { %8288 = vmatmul.mubr.msk.f32.gmra.mrb[48].mxu1 %vm158_vm1, %v143_v10  ;;  %8727 = vmatmul.mubr.msk.f32.gmra.mrb[14].mxu0 %vm158_vm1, %v10069_v11  ;;  %v10328_v10 = vld [vmem:[%s12291_s0 + $0x60] sm:$0xff] }
  0x66   :  { %8290 = vmatprep.mubr.msk.f32.mxu1 %vm158_vm1, %v144_v12  ;;  %8729 = vmatprep.mubr.msk.f32.mxu0 %vm158_vm1, %v10077_v13  ;;  %v10333_v12 = vld [vmem:[%s12291_s0 + $0x212] sm:$0xff] }
  0x67   :  { %12341 = vst [vmem:[#allocation14_spill] sm:$0xff] %v10333_v12 }
  0x69   :  { %8291 = vmatmul.mubr.msk.f32.gmra.mrb[50].mxu1 %vm158_vm1, %v145_v14  ;;  %8730 = vmatmul.mubr.msk.f32.gmra.mrb[16].mxu0 %vm158_vm1, %v10091_v15  ;;  %v10348_v14 = vld [vmem:[%s12291_s0 + $0x68] sm:$0xff] }
  0x6a   :  { %8293 = vmatprep.mubr.msk.f32.mxu1 %vm158_vm1, %v146_v16  ;;  %8732 = vmatprep.mubr.msk.f32.mxu0 %vm158_vm1, %v10099_v17  ;;  %v10353_v16 = vld [vmem:[%s12291_s0 + $0x21a] sm:$0xff] }
  0x6b   :  { %12342 = vst [vmem:[#allocation15_spill] sm:$0xff] %v10353_v16 }
  0x6d   :  { %8294 = vmatmul.mubr.msk.f32.gmra.mrb[52].mxu1 %vm158_vm1, %v147_v18  ;;  %8733 = vmatmul.mubr.msk.f32.gmra.mrb[18].mxu0 %vm158_vm1, %v10113_v19  ;;  %v10358_v18 = vld [vmem:[%s12291_s0 + $0x78] sm:$0xff] }
  0x6e   :  { %8296 = vmatprep.mubr.msk.f32.mxu1 %vm158_vm1, %v148_v20  ;;  %8735 = vmatprep.mubr.msk.f32.mxu0 %vm158_vm1, %v10121_v21  ;;  %v10363_v20 = vld [vmem:[%s12291_s0 + $0x22a] sm:$0xff] }
  0x6f   :  { %12343 = vst [vmem:[#allocation16_spill] sm:$0xff] %v10363_v20 }
  0x71   :  { %8297 = vmatmul.mubr.msk.f32.gmra.mrb[54].mxu1 %vm158_vm1, %v149_v22  ;;  %8736 = vmatmul.mubr.msk.f32.gmra.mrb[20].mxu0 %vm158_vm1, %v10135_v23  ;;  %v10376_v22 = vld [vmem:[%s12291_s0 + $0x80] sm:$0xff] }
  0x72   :  { %8299 = vmatprep.mubr.msk.f32.mxu1 %vm158_vm1, %v150_v24  ;;  %8738 = vmatprep.mubr.msk.f32.mxu0 %vm158_vm1, %v10143_v25  ;;  %v10381_v24 = vld [vmem:[%s12291_s0 + $0x232] sm:$0xff] }
  0x73   :  { %12344 = vst [vmem:[#allocation17_spill] sm:$0xff] %v10381_v24 }
  0x75   :  { %8300 = vmatmul.mubr.msk.f32.gmra.mrb[56].mxu1 %vm158_vm1, %v151_v26  ;;  %8739 = vmatmul.mubr.msk.f32.gmra.mrb[22].mxu0 %vm158_vm1, %v10157_v28  ;;  %v10386_v26 = vld [vmem:[%s12291_s0 + $0x90] sm:$0xff] }
  0x76   :  { %8302 = vmatprep.mubr.msk.f32.mxu1 %vm158_vm1, %v152_v29  ;;  %8741 = vmatprep.mubr.msk.f32.mxu0 %vm158_vm1, %v10165_v30  ;;  %v10391_v29 = vld [vmem:[%s12291_s0 + $0x242] sm:$0xff] }
  0x77   :  { %12345 = vst [vmem:[#allocation18_spill] sm:$0xff] %v10391_v29 }
  0x79   :  { %8303 = vmatmul.mubr.msk.f32.gmra.mrb[58].mxu1 %vm158_vm1, %v153_v31  ;;  %8742 = vmatmul.mubr.msk.f32.gmra.mrb[24].mxu0 %vm158_vm1, %v10179_v32  ;;  %v10404_v31 = vld [vmem:[%s12291_s0 + $0x98] sm:$0xff] }
  0x7a   :  { %8305 = vmatprep.mubr.msk.f32.mxu1 %vm158_vm1, %v154_v33  ;;  %8744 = vmatprep.mubr.msk.f32.mxu0 %vm158_vm1, %v10187_v34  ;;  %v10409_v33 = vld [vmem:[%s12291_s0 + $0x24a] sm:$0xff] }
  0x7b   :  { %12346 = vst [vmem:[#allocation19_spill] sm:$0xff] %v10409_v33 }
  0x7d   :  { %8306 = vmatmul.mubr.msk.f32.gmra.mrb[60].mxu1 %vm158_vm1, %v155_v35  ;;  %8745 = vmatmul.mubr.msk.f32.gmra.mrb[26].mxu0 %vm158_vm1, %v10201_v36  ;;  %v10414_v35 = vld [vmem:[%s12291_s0 + $0xa8] sm:$0xff] }
  0x7e   :  { %8308 = vmatprep.mubr.msk.f32.mxu1 %vm158_vm1, %v156_v37  ;;  %8747 = vmatprep.mubr.msk.f32.mxu0 %vm158_vm1, %v10209_v38  ;;  %v10419_v37 = vld [vmem:[%s12291_s0 + $0x25a] sm:$0xff]  ;;  %v64_v36 = vld [vmem:[%s12291_s0 + $0x1c8] sm:$0xff] }
  0x7f   :  { %12347 = vst [vmem:[#allocation20_spill] sm:$0xff] %v10419_v37  ;;  %v7170_v38 = vld [vmem:[%s12291_s0 + $0x33a] sm:$0xff] }
  0x81   :  { %8309 = vmatmul.mubr.msk.f32.gmra.mrb[62].mxu1 %vm158_vm1, %v157_v39  ;;  %8748 = vmatmul.mubr.msk.f32.gmra.mrb[28].mxu0 %vm158_vm1, %v10223_v40  ;;  %v10432_v39 = vld [vmem:[%s12291_s0 + $0xb0] sm:$0xff] }
  0x82   :  { %8313 = vmatprep.mubr.msk.f32.mxu1 %vm158_vm1, %v30_v41  ;;  %8750 = vmatprep.mubr.msk.f32.mxu0 %vm158_vm1, %v7137_v42  ;;  %v10437_v41 = vld [vmem:[%s12291_s0 + $0x262] sm:$0xff]  ;;  %v7169_v40 = vld [vmem:[%s12291_s0 + $0x332] sm:$0xff] }
  0x83   :  { %12348 = vst [vmem:[#allocation21_spill] sm:$0xff] %v10437_v41  ;;  %v10442_v42 = vld [vmem:[%s12291_s0 + $0xc0] sm:$0xff] }
  0x85   :  { %8314 = vmatmul.mubr.msk.f32.vlgmr.msra.gmra.mrb[0].mxu1 %vm158_vm1, %v31_v43  ;;  %8751 = vmatmul.mubr.msk.f32.gmra.mrb[30].mxu0 %vm158_vm1, %v7138_v46  ;;  %v10447_v43 = vld [vmem:[%s12291_s0 + $0x272] sm:$0xff]  ;;  %v10460_v46 = vld [vmem:[%s12291_s0 + $0xc8] sm:$0xff] }
  0x86   :  { %8316 = vmatprep.mubr.msk.f32.mxu1 %vm158_vm1, %v32_v49  ;;  %8753 = vmatprep.mubr.msk.f32.mxu0 %vm158_vm1, %v10248_v51  ;;  %12349 = vst [vmem:[#allocation22_spill] sm:$0xff] %v10447_v43  ;;  %v10465_v49 = vld [vmem:[%s12291_s0 + $0x27a] sm:$0xff]  ;;  %v10661_v51 = vld [vmem:[%s12291_s0 + $0x322] sm:$0xff] }
  0x87   :  { %8410 = vmatpush3.msk.msra.mxu1 %vm351_vm0, %v9813_v27  ;;  %v10290_v27 = vld [vmem:[%s12291_s0 + $0x1ea] sm:$0xff]  ;;  %12350 = vst [vmem:[#allocation23_spill] sm:$0xff] %v10465_v49 }
  0x88   :  { %12338 = vst [vmem:[#allocation11_spill] sm:$0xff] %v10290_v27  ;;  %8507 = vmatprep.subr.msk.mxu1 %vm351_vm0, %v10309_v4 }
  0x89   :  { %8317 = vmatmul.mubr.msk.f32.gmra.mrb[2].mxu1 %vm158_vm1, %v33_v53  ;;  %8754 = vmatmul.mubr.msk.f32.gmra.mrb[32].mxu0 %vm158_vm1, %v10261_v55  ;;  %v10470_v53 = vld [vmem:[%s12291_s0 + $0xd8] sm:$0xff] }
  0x8a   :  { %8319 = vmatprep.mubr.msk.f32.mxu1 %vm158_vm1, %v10266_v57  ;;  %8756 = vmatprep.mubr.msk.f32.mxu0 %vm158_vm1, %v10271_v59  ;;  %v10633_v59 = vld [vmem:[%s12291_s0 + $0x30a] sm:$0xff]  ;;  %v10643_v55 = vld [vmem:[%s12291_s0 + $0x31a] sm:$0xff] }
  0x8b   :  { %12362 = vst [vmem:[#allocation35_spill] sm:$0xff] %v10633_v59  ;;  %12363 = vst [vmem:[#allocation36_spill] sm:$0xff] %v10643_v55 }
  0x8d   :  { %8320 = vmatmul.mubr.msk.f32.gmra.mrb[4].mxu1 %vm158_vm1, %v10285_v61  ;;  %8757 = vmatmul.mubr.msk.f32.gmra.mrb[34].mxu0 %vm158_vm1, %v10290_v27  ;;  %v10615_v27 = vld [vmem:[%s12291_s0 + $0x302] sm:$0xff] }
  0x8e   :  { %8322 = vmatprep.mubr.msk.f32.mxu1 %vm158_vm1, %v10295_v63  ;;  %8759 = vmatprep.mubr.msk.f32.mxu0 %vm158_vm1, %v10300_v2  ;;  %v10605_v2 = vld [vmem:[%s12291_s0 + $0x2f2] sm:$0xff]  ;;  %12361 = vst [vmem:[#allocation34_spill] sm:$0xff] %v10615_v27 }
  0x8f   :  { %12360 = vst [vmem:[#allocation33_spill] sm:$0xff] %v10605_v2 }
  0x91   :  { %8323 = vmatmul.mubr.msk.f32.gmra.mrb[6].mxu1 %vm158_vm1, %v10318_v6  ;;  %8760 = vmatmul.mubr.msk.f32.gmra.mrb[36].mxu0 %vm158_vm1, %v10323_v8  ;;  %v10587_v8 = vld [vmem:[%s12291_s0 + $0x2ea] sm:$0xff] }
  0x92   :  { %8325 = vmatprep.mubr.msk.f32.mxu1 %vm158_vm1, %v10328_v10  ;;  %8762 = vmatprep.mubr.msk.f32.mxu0 %vm158_vm1, %v10333_v12  ;;  %v10577_v12 = vld [vmem:[%s12291_s0 + $0x2da] sm:$0xff]  ;;  %12359 = vst [vmem:[#allocation32_spill] sm:$0xff] %v10587_v8 }
  0x93   :  { %12358 = vst [vmem:[#allocation31_spill] sm:$0xff] %v10577_v12 }
  0x95   :  { %8326 = vmatmul.mubr.msk.f32.gmra.mrb[8].mxu1 %vm158_vm1, %v10348_v14  ;;  %8763 = vmatmul.mubr.msk.f32.gmra.mrb[38].mxu0 %vm158_vm1, %v10353_v16  ;;  %v10559_v16 = vld [vmem:[%s12291_s0 + $0x2d2] sm:$0xff] }
  0x96   :  { %8328 = vmatprep.mubr.msk.f32.mxu1 %vm158_vm1, %v10358_v18  ;;  %8765 = vmatprep.mubr.msk.f32.mxu0 %vm158_vm1, %v10363_v20  ;;  %v10549_v20 = vld [vmem:[%s12291_s0 + $0x2c2] sm:$0xff]  ;;  %12357 = vst [vmem:[#allocation30_spill] sm:$0xff] %v10559_v16 }
  0x97   :  { %12356 = vst [vmem:[#allocation29_spill] sm:$0xff] %v10549_v20 }
  0x99   :  { %8329 = vmatmul.mubr.msk.f32.gmra.mrb[10].mxu1 %vm158_vm1, %v10376_v22  ;;  %8766 = vmatmul.mubr.msk.f32.gmra.mrb[40].mxu0 %vm158_vm1, %v10381_v24  ;;  %v10531_v24 = vld [vmem:[%s12291_s0 + $0x2ba] sm:$0xff] }
  0x9a   :  { %8331 = vmatprep.mubr.msk.f32.mxu1 %vm158_vm1, %v10386_v26  ;;  %8768 = vmatprep.mubr.msk.f32.mxu0 %vm158_vm1, %v10391_v29  ;;  %v10521_v29 = vld [vmem:[%s12291_s0 + $0x2aa] sm:$0xff]  ;;  %12355 = vst [vmem:[#allocation28_spill] sm:$0xff] %v10531_v24 }
  0x9b   :  { %12354 = vst [vmem:[#allocation27_spill] sm:$0xff] %v10521_v29 }
  0x9d   :  { %8332 = vmatmul.mubr.msk.f32.gmra.mrb[12].mxu1 %vm158_vm1, %v10404_v31  ;;  %8769 = vmatmul.mubr.msk.f32.gmra.mrb[42].mxu0 %vm158_vm1, %v10409_v33  ;;  %v10503_v33 = vld [vmem:[%s12291_s0 + $0x2a2] sm:$0xff] }
  0x9e   :  { %8334 = vmatprep.mubr.msk.f32.mxu1 %vm158_vm1, %v10414_v35  ;;  %8771 = vmatprep.mubr.msk.f32.mxu0 %vm158_vm1, %v10419_v37  ;;  %v10493_v37 = vld [vmem:[%s12291_s0 + $0x292] sm:$0xff]  ;;  %12353 = vst [vmem:[#allocation26_spill] sm:$0xff] %v10503_v33 }
  0x9f   :  { %12352 = vst [vmem:[#allocation25_spill] sm:$0xff] %v10493_v37 }
  0xa1   :  { %8335 = vmatmul.mubr.msk.f32.gmra.mrb[14].mxu1 %vm158_vm1, %v10432_v39  ;;  %8772 = vmatmul.mubr.msk.f32.gmra.mrb[44].mxu0 %vm158_vm1, %v10437_v41  ;;  %v10475_v41 = vld [vmem:[%s12291_s0 + $0x28a] sm:$0xff] }
  0xa2   :  { %8337 = vmatprep.mubr.msk.f32.mxu1 %vm158_vm1, %v10442_v42  ;;  %8774 = vmatprep.mubr.msk.f32.mxu0 %vm158_vm1, %v10447_v43  ;;  %12351 = vst [vmem:[#allocation24_spill] sm:$0xff] %v10475_v41  ;;  %v10488_v43 = vld [vmem:[%s12291_s0 + $0xe0] sm:$0xff] }
  0xa5   :  { %8338 = vmatmul.mubr.msk.f32.gmra.mrb[16].mxu1 %vm158_vm1, %v10460_v46  ;;  %8775 = vmatmul.mubr.msk.f32.gmra.mrb[46].mxu0 %vm158_vm1, %v10465_v49  ;;  %v10498_v49 = vld [vmem:[%s12291_s0 + $0xf0] sm:$0xff] }
  0xa6   :  { %8340 = vmatprep.mubr.msk.f32.mxu1 %vm158_vm1, %v10470_v53  ;;  %8777 = vmatprep.mubr.msk.f32.mxu0 %vm158_vm1, %v10475_v41  ;;  %v10516_v41 = vld [vmem:[%s12291_s0 + $0xf8] sm:$0xff] }
  0xa9   :  { %8341 = vmatmul.mubr.msk.f32.gmra.mrb[18].mxu1 %vm158_vm1, %v10488_v43  ;;  %8778 = vmatmul.mubr.msk.f32.gmra.mrb[48].mxu0 %vm158_vm1, %v10493_v37  ;;  %v10526_v37 = vld [vmem:[%s12291_s0 + $0x108] sm:$0xff] }
  0xaa   :  { %8343 = vmatprep.mubr.msk.f32.mxu1 %vm158_vm1, %v10498_v49  ;;  %8780 = vmatprep.mubr.msk.f32.mxu0 %vm158_vm1, %v10503_v33  ;;  %v10544_v33 = vld [vmem:[%s12291_s0 + $0x110] sm:$0xff] }
  0xad   :  { %8344 = vmatmul.mubr.msk.f32.gmra.mrb[20].mxu1 %vm158_vm1, %v10516_v41  ;;  %8781 = vmatmul.mubr.msk.f32.gmra.mrb[50].mxu0 %vm158_vm1, %v10521_v29  ;;  %v10554_v29 = vld [vmem:[%s12291_s0 + $0x120] sm:$0xff] }
  0xae   :  { %8346 = vmatprep.mubr.msk.f32.mxu1 %vm158_vm1, %v10526_v37  ;;  %8783 = vmatprep.mubr.msk.f32.mxu0 %vm158_vm1, %v10531_v24  ;;  %v10572_v24 = vld [vmem:[%s12291_s0 + $0x128] sm:$0xff] }
  0xb1   :  { %8347 = vmatmul.mubr.msk.f32.gmra.mrb[22].mxu1 %vm158_vm1, %v10544_v33  ;;  %8784 = vmatmul.mubr.msk.f32.gmra.mrb[52].mxu0 %vm158_vm1, %v10549_v20  ;;  %v10582_v20 = vld [vmem:[%s12291_s0 + $0x138] sm:$0xff] }
  0xb2   :  { %8349 = vmatprep.mubr.msk.f32.mxu1 %vm158_vm1, %v10554_v29  ;;  %8786 = vmatprep.mubr.msk.f32.mxu0 %vm158_vm1, %v10559_v16  ;;  %v10600_v16 = vld [vmem:[%s12291_s0 + $0x140] sm:$0xff] }
  0xb5   :  { %8350 = vmatmul.mubr.msk.f32.gmra.mrb[24].mxu1 %vm158_vm1, %v10572_v24  ;;  %8787 = vmatmul.mubr.msk.f32.gmra.mrb[54].mxu0 %vm158_vm1, %v10577_v12  ;;  %v10610_v12 = vld [vmem:[%s12291_s0 + $0x150] sm:$0xff] }
  0xb6   :  { %8352 = vmatprep.mubr.msk.f32.mxu1 %vm158_vm1, %v10582_v20  ;;  %8789 = vmatprep.mubr.msk.f32.mxu0 %vm158_vm1, %v10587_v8  ;;  %v10628_v8 = vld [vmem:[%s12291_s0 + $0x158] sm:$0xff] }
  0xb9   :  { %8353 = vmatmul.mubr.msk.f32.gmra.mrb[26].mxu1 %vm158_vm1, %v10600_v16  ;;  %8790 = vmatmul.mubr.msk.f32.gmra.mrb[56].mxu0 %vm158_vm1, %v10605_v2  ;;  %v10638_v2 = vld [vmem:[%s12291_s0 + $0x168] sm:$0xff] }
  0xba   :  { %8355 = vmatprep.mubr.msk.f32.mxu1 %vm158_vm1, %v10610_v12  ;;  %8792 = vmatprep.mubr.msk.f32.mxu0 %vm158_vm1, %v10615_v27  ;;  %v10656_v27 = vld [vmem:[%s12291_s0 + $0x170] sm:$0xff] }
  0xbd   :  { %8356 = vmatmul.mubr.msk.f32.gmra.mrb[28].mxu1 %vm158_vm1, %v10628_v8  ;;  %8793 = vmatmul.mubr.msk.f32.gmra.mrb[58].mxu0 %vm158_vm1, %v10633_v59  ;;  %v62_v59 = vld [vmem:[%s12291_s0 + $0x1b0] sm:$0xff] }
  0xbe   :  { %8358 = vmatprep.mubr.msk.f32.mxu1 %vm158_vm1, %v10638_v2  ;;  %8795 = vmatprep.mubr.msk.f32.mxu0 %vm158_vm1, %v10643_v55  ;;  %v63_v55 = vld [vmem:[%s12291_s0 + $0x1b8] sm:$0xff] }
  0xc1   :  { %8359 = vmatmul.mubr.msk.f32.gmra.mrb[30].mxu1 %vm158_vm1, %v10656_v27  ;;  %8796 = vmatmul.mubr.msk.f32.gmra.mrb[60].mxu0 %vm158_vm1, %v10661_v51 }
  0xc2   :  { %8361 = vmatprep.mubr.msk.f32.mxu1 %vm158_vm1, %v62_v59  ;;  %8798 = vmatprep.mubr.msk.f32.mxu0 %vm158_vm1, %v7169_v40  ;;  %v65_v40 = vld [vmem:[%s12291_s0 + $0x1d0] sm:$0xff]  ;;  %v10695_v59 = vld [vmem:[%s12291_s0 + $0x1e0] sm:$0xff] }
  0xc5   :  { %8362 = vmatmul.mubr.msk.f32.gmra.mrb[32].mxu1 %vm158_vm1, %v63_v55  ;;  %8799 = vmatmul.mubr.msk.f32.gmra.mrb[62].mxu0 %vm158_vm1, %v7170_v38  ;;  %v10712_v38 = vld [vmem:[%s12291_s0 + $0x1e8] sm:$0xff]  ;;  %v10719_v55 = vld [vmem:[%s12291_s0 + $0x1f8] sm:$0xff] }
  0xc6   :  { %8364 = vmatprep.mubr.msk.f32.mxu1 %vm158_vm1, %v64_v36  ;;  %8803 = vmatprep.mubr.msk.f32.mxu0 %vm158_vm1, %v10266_v57  ;;  %v10703_v36 = vld [vmem:[%s12292_s1 + $0x20] sm:$0xf]  ;;  %v10739_v57 = vld [vmem:[%s12291_s0 + $0x210] sm:$0xff] }
  0xc9   :  { %8365 = vmatmul.mubr.msk.f32.gmra.mrb[34].mxu1 %vm158_vm1, %v65_v40  ;;  %8804 = vmatmul.mubr.msk.f32.vlgmr.msra.gmra.mrb[0].mxu0 %vm158_vm1, %v10285_v61  ;;  %v10752_v61 = vld [vmem:[%s12291_s0 + $0x218] sm:$0xff]  ;;  %v1321_v40 = vld [vmem:[%s12291_s0 + $0xa] sm:$0xff] }
  0xca   :  { %8900 = vmatpush3.msk.msra.mxu0 %vm351_vm0, %v9922_v48  ;;  %8367 = vmatprep.mubr.msk.f32.mxu1 %vm158_vm1, %v10695_v59  ;;  %v10734_v48 = vld [vmem:[%s12291_s0 + $0x200] sm:$0xff] }
  0xcb   :  { %8806 = vmatprep.mubr.msk.f32.mxu0 %vm158_vm1, %v10295_v63  ;;  %8997 = vmatprep.subr.msk.mxu0 %vm351_vm0, %v10703_v36  ;;  %v10757_v63 = vld [vmem:[%s12291_s0 + $0x228] sm:$0xff] }
  0xcd   :  { %8368 = vmatmul.mubr.msk.f32.gmra.mrb[36].mxu1 %vm158_vm1, %v10712_v38  ;;  %8807 = vmatmul.mubr.msk.f32.gmra.mrb[2].mxu0 %vm158_vm1, %v10318_v6  ;;  %v10770_v6 = vld [vmem:[%s12291_s0 + $0x230] sm:$0xff] }
  0xce   :  { %8370 = vmatprep.mubr.msk.f32.mxu1 %vm158_vm1, %v10719_v55  ;;  %8809 = vmatprep.mubr.msk.f32.mxu0 %vm158_vm1, %v10328_v10  ;;  %v10775_v10 = vld [vmem:[%s12291_s0 + $0x240] sm:$0xff] }
  0xd1   :  { %8371 = vmatmul.mubr.msk.f32.gmra.mrb[38].mxu1 %vm158_vm1, %v10734_v48  ;;  %8810 = vmatmul.mubr.msk.f32.gmra.mrb[4].mxu0 %vm158_vm1, %v10348_v14  ;;  %v10788_v14 = vld [vmem:[%s12291_s0 + $0x248] sm:$0xff] }
  0xd2   :  { %8373 = vmatprep.mubr.msk.f32.mxu1 %vm158_vm1, %v10739_v57  ;;  %8812 = vmatprep.mubr.msk.f32.mxu0 %vm158_vm1, %v10358_v18  ;;  %v10793_v18 = vld [vmem:[%s12291_s0 + $0x258] sm:$0xff] }
  0xd5   :  { %8374 = vmatmul.mubr.msk.f32.gmra.mrb[40].mxu1 %vm158_vm1, %v10752_v61  ;;  %8813 = vmatmul.mubr.msk.f32.gmra.mrb[6].mxu0 %vm158_vm1, %v10376_v22  ;;  %v10806_v22 = vld [vmem:[%s12291_s0 + $0x260] sm:$0xff] }
  0xd6   :  { %8376 = vmatprep.mubr.msk.f32.mxu1 %vm158_vm1, %v10757_v63  ;;  %8815 = vmatprep.mubr.msk.f32.mxu0 %vm158_vm1, %v10386_v26  ;;  %v10811_v26 = vld [vmem:[%s12291_s0 + $0x270] sm:$0xff] }
  0xd9   :  { %8377 = vmatmul.mubr.msk.f32.gmra.mrb[42].mxu1 %vm158_vm1, %v10770_v6  ;;  %8816 = vmatmul.mubr.msk.f32.gmra.mrb[8].mxu0 %vm158_vm1, %v10404_v31  ;;  %v10824_v31 = vld [vmem:[%s12291_s0 + $0x278] sm:$0xff] }
  0xda   :  { %8379 = vmatprep.mubr.msk.f32.mxu1 %vm158_vm1, %v10775_v10  ;;  %8818 = vmatprep.mubr.msk.f32.mxu0 %vm158_vm1, %v10414_v35  ;;  %v10829_v35 = vld [vmem:[%s12291_s0 + $0x288] sm:$0xff] }
  0xdd   :  { %8380 = vmatmul.mubr.msk.f32.gmra.mrb[44].mxu1 %vm158_vm1, %v10788_v14  ;;  %8819 = vmatmul.mubr.msk.f32.gmra.mrb[10].mxu0 %vm158_vm1, %v10432_v39  ;;  %v10842_v39 = vld [vmem:[%s12291_s0 + $0x290] sm:$0xff] }
  0xde   :  { %8382 = vmatprep.mubr.msk.f32.mxu1 %vm158_vm1, %v10793_v18  ;;  %8821 = vmatprep.mubr.msk.f32.mxu0 %vm158_vm1, %v10442_v42  ;;  %v10847_v42 = vld [vmem:[%s12291_s0 + $0x2a0] sm:$0xff] }
  0xe1   :  { %8383 = vmatmul.mubr.msk.f32.gmra.mrb[46].mxu1 %vm158_vm1, %v10806_v22  ;;  %8822 = vmatmul.mubr.msk.f32.gmra.mrb[12].mxu0 %vm158_vm1, %v10460_v46  ;;  %v10865_v46 = vld [vmem:[%s12291_s0 + $0x2b8] sm:$0xff] }
  0xe2   :  { %8385 = vmatprep.mubr.msk.f32.mxu1 %vm158_vm1, %v10811_v26  ;;  %8824 = vmatprep.mubr.msk.f32.mxu0 %vm158_vm1, %v10470_v53  ;;  %v7266_v53 = vld [vmem:[%s12291_s0 + $0x198] sm:$0xff] }
  0xe5   :  { %8386 = vmatmul.mubr.msk.f32.gmra.mrb[48].mxu1 %vm158_vm1, %v10824_v31  ;;  %8825 = vmatmul.mubr.msk.f32.gmra.mrb[14].mxu0 %vm158_vm1, %v10488_v43  ;;  %v10860_v43 = vld [vmem:[%s12291_s0 + $0x2a8] sm:$0xff] }
  0xe6   :  { %8388 = vmatprep.mubr.msk.f32.mxu1 %vm158_vm1, %v10829_v35  ;;  %8827 = vmatprep.mubr.msk.f32.mxu0 %vm158_vm1, %v10498_v49  ;;  %v10960_v49 = vld [vmem:[%s12291_s0 + $0x188] sm:$0xff] }
  0xe9   :  { %8389 = vmatmul.mubr.msk.f32.gmra.mrb[50].mxu1 %vm158_vm1, %v10842_v39  ;;  %8828 = vmatmul.mubr.msk.f32.gmra.mrb[16].mxu0 %vm158_vm1, %v10516_v41  ;;  %v10883_v41 = vld [vmem:[%s12291_s0 + $0x2d0] sm:$0xff] }
  0xea   :  { %8391 = vmatprep.mubr.msk.f32.mxu1 %vm158_vm1, %v10847_v42  ;;  %8830 = vmatprep.mubr.msk.f32.mxu0 %vm158_vm1, %v10526_v37  ;;  %v10878_v37 = vld [vmem:[%s12291_s0 + $0x2c0] sm:$0xff] }
  0xed   :  { %8392 = vmatmul.mubr.msk.f32.gmra.mrb[52].mxu1 %vm158_vm1, %v10860_v43  ;;  %8831 = vmatmul.mubr.msk.f32.gmra.mrb[18].mxu0 %vm158_vm1, %v10544_v33  ;;  %v10901_v33 = vld [vmem:[%s12291_s0 + $0x2e8] sm:$0xff] }
  0xee   :  { %8394 = vmatprep.mubr.msk.f32.mxu1 %vm158_vm1, %v10865_v46  ;;  %8833 = vmatprep.mubr.msk.f32.mxu0 %vm158_vm1, %v10554_v29  ;;  %v10896_v29 = vld [vmem:[%s12291_s0 + $0x2d8] sm:$0xff] }
  0xf1   :  { %8395 = vmatmul.mubr.msk.f32.gmra.mrb[54].mxu1 %vm158_vm1, %v10878_v37  ;;  %8834 = vmatmul.mubr.msk.f32.gmra.mrb[20].mxu0 %vm158_vm1, %v10572_v24  ;;  %v10919_v24 = vld [vmem:[%s12291_s0 + $0x300] sm:$0xff] }
  0xf2   :  { %8397 = vmatprep.mubr.msk.f32.mxu1 %vm158_vm1, %v10883_v41  ;;  %8836 = vmatprep.mubr.msk.f32.mxu0 %vm158_vm1, %v10582_v20  ;;  %v10914_v20 = vld [vmem:[%s12291_s0 + $0x2f0] sm:$0xff] }
  0xf5   :  { %8398 = vmatmul.mubr.msk.f32.gmra.mrb[56].mxu1 %vm158_vm1, %v10896_v29  ;;  %8837 = vmatmul.mubr.msk.f32.gmra.mrb[22].mxu0 %vm158_vm1, %v10600_v16  ;;  %v10937_v16 = vld [vmem:[%s12291_s0 + $0x318] sm:$0xff] }
  0xf6   :  { %8400 = vmatprep.mubr.msk.f32.mxu1 %vm158_vm1, %v10901_v33  ;;  %8839 = vmatprep.mubr.msk.f32.mxu0 %vm158_vm1, %v10610_v12  ;;  %v10932_v12 = vld [vmem:[%s12291_s0 + $0x308] sm:$0xff] }
  0xf9   :  { %8401 = vmatmul.mubr.msk.f32.gmra.mrb[58].mxu1 %vm158_vm1, %v10914_v20  ;;  %8840 = vmatmul.mubr.msk.f32.gmra.mrb[24].mxu0 %vm158_vm1, %v10628_v8  ;;  %v10942_v8 = vld [vmem:[%s12291_s0 + $0x180] sm:$0xff] }
  0xfa   :  { %8403 = vmatprep.mubr.msk.f32.mxu1 %vm158_vm1, %v10919_v24  ;;  %8842 = vmatprep.mubr.msk.f32.mxu0 %vm158_vm1, %v10638_v2  ;;  %12364 = vst [vmem:[#allocation37_spill] sm:$0xff] %v10942_v8  ;;  %v10955_v2 = vld [vmem:[%s12291_s0 + $0x320] sm:$0xff] }
  0xfd   :  { %8404 = vmatmul.mubr.msk.f32.gmra.mrb[60].mxu1 %vm158_vm1, %v10932_v12  ;;  %8843 = vmatmul.mubr.msk.f32.gmra.mrb[26].mxu0 %vm158_vm1, %v10656_v27  ;;  %v1320_v27 = vld [vmem:[%s12291_s0 + $0x2] sm:$0xff] }
  0xfe   :  { %8406 = vmatprep.mubr.msk.f32.mxu1 %vm158_vm1, %v10937_v16  ;;  %8845 = vmatprep.mubr.msk.f32.mxu0 %vm158_vm1, %v10942_v8  ;;  %v7267_v8 = vld [vmem:[%s12291_s0 + $0x1a0] sm:$0xff] }
 0x101   :  { %8407 = vmatmul.mubr.msk.f32.gmra.mrb[62].mxu1 %vm158_vm1, %v10955_v2  ;;  %8846 = vmatmul.mubr.msk.f32.gmra.mrb[28].mxu0 %vm158_vm1, %v10960_v49 }
 0x102   :  { %8411 = vmatprep.mubr.msk.f32.mxu1 %vm158_vm1, %v1320_v27  ;;  %8848 = vmatprep.mubr.msk.f32.mxu0 %vm158_vm1, %v7266_v53  ;;  %v7376_v27 = vld [vmem:[%s12291_s0 + $0xb1] sm:$0xff]  ;;  %v7377_v53 = vld [vmem:[%s12291_s0 + $0xc1] sm:$0xff] }
 0x105   :  { %8412 = vmatmul.mubr.msk.f32.vlgmr.msra.gmra.mrb[0].mxu1 %vm158_vm1, %v1321_v40  ;;  %8849 = vmatmul.mubr.msk.f32.gmra.mrb[30].mxu0 %vm158_vm1, %v7267_v8  ;;  %v12378_v8 = vld [vmem:[#allocation18_spill] sm:$0xff]  ;;  %v12379_v40 = vld [vmem:[#allocation19_spill] sm:$0xff] }
 0x106   :  { %8414 = vmatprep.mubr.msk.f32.mxu1 %vm158_vm1, %v9896_v44  ;;  %8851 = vmatprep.mubr.msk.f32.mxu0 %vm158_vm1, %v10695_v59  ;;  %v12365_v44 = vld [vmem:[#allocation5_spill] sm:$0xff] }
 0x107   :  { %8508 = vmatpush3.msk.msra.mxu1 %vm351_vm0, %v10309_v4  ;;  %v7375_v4 = vld [vmem:[%s12291_s0 + $0xa9] sm:$0xff] }
 0x108   :  { %9100 = vmatprep.subr.msk.mxu1 %vm351_vm0, %v9681_v1  ;;  %v11097_v1 = vld [vmem:[%s12291_s0 + $0x330] sm:$0xff] }
 0x109   :  { %8415 = vmatmul.mubr.msk.f32.gmra.mrb[2].mxu1 %vm158_vm1, %v9906_v45  ;;  %8852 = vmatmul.mubr.msk.f32.gmra.mrb[32].mxu0 %vm158_vm1, %v10712_v38  ;;  %v12366_v45 = vld [vmem:[#allocation6_spill] sm:$0xff] }
 0x10a   :  { %8417 = vmatprep.mubr.msk.f32.mxu1 %vm158_vm1, %v9914_v47  ;;  %8854 = vmatprep.mubr.msk.f32.mxu0 %vm158_vm1, %v10719_v55  ;;  %v11110_v47 = vld [vmem:[%s12291_s0 + $0x338] sm:$0xff] }
 0x10d   :  { %8418 = vmatmul.mubr.msk.f32.gmra.mrb[4].mxu1 %vm158_vm1, %v9933_v50  ;;  %8855 = vmatmul.mubr.msk.f32.gmra.mrb[34].mxu0 %vm158_vm1, %v10734_v48  ;;  %v1352_v50 = vld [vmem:[%s12291_s0 + $0x1b2] sm:$0xff] }
 0x10e   :  { %8420 = vmatprep.mubr.msk.f32.mxu1 %vm158_vm1, %v9943_v52  ;;  %8857 = vmatprep.mubr.msk.f32.mxu0 %vm158_vm1, %v10739_v57  ;;  %v7298_v52 = vld [vmem:[%s12291_s0 + $0x348] sm:$0xff] }
 0x111   :  { %8421 = vmatmul.mubr.msk.f32.gmra.mrb[6].mxu1 %vm158_vm1, %v9959_v54  ;;  %8858 = vmatmul.mubr.msk.f32.gmra.mrb[36].mxu0 %vm158_vm1, %v10752_v61  ;;  %v12367_v54 = vld [vmem:[#allocation7_spill] sm:$0xff] }
 0x112   :  { %8423 = vmatprep.mubr.msk.f32.mxu1 %vm158_vm1, %v9967_v56  ;;  %8860 = vmatprep.mubr.msk.f32.mxu0 %vm158_vm1, %v10757_v63  ;;  %v1353_v56 = vld [vmem:[%s12291_s0 + $0x1ba] sm:$0xff] }
 0x115   :  { %8424 = vmatmul.mubr.msk.f32.gmra.mrb[8].mxu1 %vm158_vm1, %v9981_v58  ;;  %8861 = vmatmul.mubr.msk.f32.gmra.mrb[38].mxu0 %vm158_vm1, %v10770_v6  ;;  %v7299_v58 = vld [vmem:[%s12291_s0 + $0x350] sm:$0xff] }
 0x116   :  { %8426 = vmatprep.mubr.msk.f32.mxu1 %vm158_vm1, %v9989_v60  ;;  %8863 = vmatprep.mubr.msk.f32.mxu0 %vm158_vm1, %v10775_v10  ;;  %v7365_v60 = vld [vmem:[%s12291_s0 + $0x31] sm:$0xff] }
 0x119   :  { %8427 = vmatmul.mubr.msk.f32.gmra.mrb[10].mxu1 %vm158_vm1, %v10003_v62  ;;  %8864 = vmatmul.mubr.msk.f32.gmra.mrb[40].mxu0 %vm158_vm1, %v10788_v14  ;;  %v12368_v62 = vld [vmem:[#allocation8_spill] sm:$0xff] }
 0x11a   :  { %8429 = vmatprep.mubr.msk.f32.mxu1 %vm158_vm1, %v10011_v0  ;;  %8866 = vmatprep.mubr.msk.f32.mxu0 %vm158_vm1, %v10793_v18  ;;  %v7366_v0 = vld [vmem:[%s12291_s0 + $0x39] sm:$0xff] }
 0x11d   :  { %8430 = vmatmul.mubr.msk.f32.gmra.mrb[12].mxu1 %vm158_vm1, %v10025_v3  ;;  %8867 = vmatmul.mubr.msk.f32.gmra.mrb[42].mxu0 %vm158_vm1, %v10806_v22  ;;  %v7367_v3 = vld [vmem:[%s12291_s0 + $0x49] sm:$0xff] }
 0x11e   :  { %8432 = vmatprep.mubr.msk.f32.mxu1 %vm158_vm1, %v10033_v5  ;;  %8869 = vmatprep.mubr.msk.f32.mxu0 %vm158_vm1, %v10811_v26  ;;  %v12369_v5 = vld [vmem:[#allocation9_spill] sm:$0xff] }
 0x121   :  { %8433 = vmatmul.mubr.msk.f32.gmra.mrb[14].mxu1 %vm158_vm1, %v10047_v7  ;;  %8870 = vmatmul.mubr.msk.f32.gmra.mrb[44].mxu0 %vm158_vm1, %v10824_v31  ;;  %v12370_v7 = vld [vmem:[#allocation10_spill] sm:$0xff] }
 0x122   :  { %8435 = vmatprep.mubr.msk.f32.mxu1 %vm158_vm1, %v10055_v9  ;;  %8872 = vmatprep.mubr.msk.f32.mxu0 %vm158_vm1, %v10829_v35  ;;  %v7368_v9 = vld [vmem:[%s12291_s0 + $0x51] sm:$0xff] }
 0x125   :  { %8436 = vmatmul.mubr.msk.f32.gmra.mrb[16].mxu1 %vm158_vm1, %v10069_v11  ;;  %8873 = vmatmul.mubr.msk.f32.gmra.mrb[46].mxu0 %vm158_vm1, %v10842_v39  ;;  %v7369_v11 = vld [vmem:[%s12291_s0 + $0x61] sm:$0xff] }
 0x126   :  { %8438 = vmatprep.mubr.msk.f32.mxu1 %vm158_vm1, %v10077_v13  ;;  %8875 = vmatprep.mubr.msk.f32.mxu0 %vm158_vm1, %v10847_v42  ;;  %v12371_v13 = vld [vmem:[#allocation11_spill] sm:$0xff] }
 0x129   :  { %8439 = vmatmul.mubr.msk.f32.gmra.mrb[18].mxu1 %vm158_vm1, %v10091_v15  ;;  %8876 = vmatmul.mubr.msk.f32.gmra.mrb[48].mxu0 %vm158_vm1, %v10860_v43  ;;  %v12372_v15 = vld [vmem:[#allocation12_spill] sm:$0xff] }
 0x12a   :  { %8441 = vmatprep.mubr.msk.f32.mxu1 %vm158_vm1, %v10099_v17  ;;  %8878 = vmatprep.mubr.msk.f32.mxu0 %vm158_vm1, %v10865_v46  ;;  %v7370_v17 = vld [vmem:[%s12291_s0 + $0x69] sm:$0xff] }
 0x12d   :  { %8442 = vmatmul.mubr.msk.f32.gmra.mrb[20].mxu1 %vm158_vm1, %v10113_v19  ;;  %8879 = vmatmul.mubr.msk.f32.gmra.mrb[50].mxu0 %vm158_vm1, %v10878_v37  ;;  %v7371_v19 = vld [vmem:[%s12291_s0 + $0x79] sm:$0xff] }
 0x12e   :  { %8444 = vmatprep.mubr.msk.f32.mxu1 %vm158_vm1, %v10121_v21  ;;  %8881 = vmatprep.mubr.msk.f32.mxu0 %vm158_vm1, %v10883_v41  ;;  %v12373_v21 = vld [vmem:[#allocation13_spill] sm:$0xff] }
 0x131   :  { %8445 = vmatmul.mubr.msk.f32.gmra.mrb[22].mxu1 %vm158_vm1, %v10135_v23  ;;  %8882 = vmatmul.mubr.msk.f32.gmra.mrb[52].mxu0 %vm158_vm1, %v10896_v29  ;;  %v12374_v23 = vld [vmem:[#allocation14_spill] sm:$0xff] }
 0x132   :  { %8447 = vmatprep.mubr.msk.f32.mxu1 %vm158_vm1, %v10143_v25  ;;  %8884 = vmatprep.mubr.msk.f32.mxu0 %vm158_vm1, %v10901_v33  ;;  %v7372_v25 = vld [vmem:[%s12291_s0 + $0x81] sm:$0xff] }
 0x135   :  { %8448 = vmatmul.mubr.msk.f32.gmra.mrb[24].mxu1 %vm158_vm1, %v10157_v28  ;;  %8885 = vmatmul.mubr.msk.f32.gmra.mrb[54].mxu0 %vm158_vm1, %v10914_v20  ;;  %v7373_v28 = vld [vmem:[%s12291_s0 + $0x91] sm:$0xff] }
 0x136   :  { %8450 = vmatprep.mubr.msk.f32.mxu1 %vm158_vm1, %v10165_v30  ;;  %8887 = vmatprep.mubr.msk.f32.mxu0 %vm158_vm1, %v10919_v24  ;;  %v12375_v30 = vld [vmem:[#allocation15_spill] sm:$0xff] }
 0x139   :  { %8451 = vmatmul.mubr.msk.f32.gmra.mrb[26].mxu1 %vm158_vm1, %v10179_v32  ;;  %8888 = vmatmul.mubr.msk.f32.gmra.mrb[56].mxu0 %vm158_vm1, %v10932_v12  ;;  %v12376_v32 = vld [vmem:[#allocation16_spill] sm:$0xff] }
 0x13a   :  { %8453 = vmatprep.mubr.msk.f32.mxu1 %vm158_vm1, %v10187_v34  ;;  %8890 = vmatprep.mubr.msk.f32.mxu0 %vm158_vm1, %v10937_v16  ;;  %v7374_v34 = vld [vmem:[%s12291_s0 + $0x99] sm:$0xff] }
 0x13d   :  { %8454 = vmatmul.mubr.msk.f32.gmra.mrb[28].mxu1 %vm158_vm1, %v12365_v44  ;;  %8891 = vmatmul.mubr.msk.f32.gmra.mrb[58].mxu0 %vm158_vm1, %v10955_v2  ;;  %v12380_v44 = vld [vmem:[#allocation20_spill] sm:$0xff] }
 0x13e   :  { %8456 = vmatprep.mubr.msk.f32.mxu1 %vm158_vm1, %v12366_v45  ;;  %8893 = vmatprep.mubr.msk.f32.mxu0 %vm158_vm1, %v11097_v1  ;;  %v7378_v45 = vld [vmem:[%s12291_s0 + $0xc9] sm:$0xff] }
 0x141   :  { %8457 = vmatmul.mubr.msk.f32.gmra.mrb[30].mxu1 %vm158_vm1, %v12367_v54  ;;  %8894 = vmatmul.mubr.msk.f32.gmra.mrb[60].mxu0 %vm158_vm1, %v11110_v47  ;;  %v12382_v54 = vld [vmem:[#allocation22_spill] sm:$0xff] }
 0x142   :  { %8459 = vmatprep.mubr.msk.f32.mxu1 %vm158_vm1, %v1352_v50  ;;  %8896 = vmatprep.mubr.msk.f32.mxu0 %vm158_vm1, %v7298_v52  ;;  %v7379_v50 = vld [vmem:[%s12291_s0 + $0xd9] sm:$0xff]  ;;  %v12381_v52 = vld [vmem:[#allocation21_spill] sm:$0xff] }
 0x145   :  { %8460 = vmatmul.mubr.msk.f32.gmra.mrb[32].mxu1 %vm158_vm1, %v1353_v56  ;;  %8897 = vmatmul.mubr.msk.f32.gmra.mrb[62].mxu0 %vm158_vm1, %v7299_v58  ;;  %v7380_v56 = vld [vmem:[%s12291_s0 + $0xe1] sm:$0xff]  ;;  %v7381_v58 = vld [vmem:[%s12291_s0 + $0xf1] sm:$0xff] }
 0x146   :  { %8462 = vmatprep.mubr.msk.f32.mxu1 %vm158_vm1, %v12368_v62  ;;  %8901 = vmatprep.mubr.msk.f32.mxu0 %vm158_vm1, %v7365_v60  ;;  %v12383_v60 = vld [vmem:[#allocation23_spill] sm:$0xff]  ;;  %v12384_v62 = vld [vmem:[#allocation24_spill] sm:$0xff] }
 0x149   :  { %8463 = vmatmul.mubr.msk.f32.gmra.mrb[34].mxu1 %vm158_vm1, %v12369_v5  ;;  %8902 = vmatmul.mubr.msk.f32.vlgmr.msra.gmra.mrb[0].mxu0 %vm158_vm1, %v7366_v0  ;;  %v7382_v0 = vld [vmem:[%s12291_s0 + $0xf9] sm:$0xff]  ;;  %v12385_v5 = vld [vmem:[#allocation25_spill] sm:$0xff] }
 0x14a   :  { %8998 = vmatpush3.msk.msra.mxu0 %vm351_vm0, %v10703_v36  ;;  %8465 = vmatprep.mubr.msk.f32.mxu1 %vm158_vm1, %v12370_v7  ;;  %v12377_v36 = vld [vmem:[#allocation17_spill] sm:$0xff]  ;;  %v12386_v7 = vld [vmem:[#allocation26_spill] sm:$0xff] }
 0x14b   :  { %8904 = vmatprep.mubr.msk.f32.mxu0 %vm158_vm1, %v7367_v3  ;;  %v7383_v3 = vld [vmem:[%s12291_s0 + $0x109] sm:$0xff] }
 0x14d   :  { %8466 = vmatmul.mubr.msk.f32.gmra.mrb[36].mxu1 %vm158_vm1, %v12371_v13  ;;  %8905 = vmatmul.mubr.msk.f32.gmra.mrb[2].mxu0 %vm158_vm1, %v7368_v9  ;;  %v7384_v9 = vld [vmem:[%s12291_s0 + $0x111] sm:$0xff] }
 0x14e   :  { %8468 = vmatprep.mubr.msk.f32.mxu1 %vm158_vm1, %v12372_v15  ;;  %8907 = vmatprep.mubr.msk.f32.mxu0 %vm158_vm1, %v7369_v11  ;;  %v7385_v11 = vld [vmem:[%s12291_s0 + $0x121] sm:$0xff]  ;;  %v12387_v13 = vld [vmem:[#allocation27_spill] sm:$0xff] }
 0x14f   :  { %v12388_v15 = vld [vmem:[#allocation28_spill] sm:$0xff] }
 0x151   :  { %8469 = vmatmul.mubr.msk.f32.gmra.mrb[38].mxu1 %vm158_vm1, %v12373_v21  ;;  %8908 = vmatmul.mubr.msk.f32.gmra.mrb[4].mxu0 %vm158_vm1, %v7370_v17  ;;  %v7386_v17 = vld [vmem:[%s12291_s0 + $0x129] sm:$0xff] }
 0x152   :  { %8471 = vmatprep.mubr.msk.f32.mxu1 %vm158_vm1, %v12374_v23  ;;  %8910 = vmatprep.mubr.msk.f32.mxu0 %vm158_vm1, %v7371_v19  ;;  %v7387_v19 = vld [vmem:[%s12291_s0 + $0x139] sm:$0xff]  ;;  %v12389_v21 = vld [vmem:[#allocation29_spill] sm:$0xff]  ;;  %v12390_v23 = vld [vmem:[#allocation30_spill] sm:$0xff] }
 0x155   :  { %8472 = vmatmul.mubr.msk.f32.gmra.mrb[40].mxu1 %vm158_vm1, %v12375_v30  ;;  %8911 = vmatmul.mubr.msk.f32.gmra.mrb[6].mxu0 %vm158_vm1, %v7372_v25  ;;  %v7388_v25 = vld [vmem:[%s12291_s0 + $0x141] sm:$0xff]  ;;  %v12391_v30 = vld [vmem:[#allocation31_spill] sm:$0xff] }
 0x156   :  { %8474 = vmatprep.mubr.msk.f32.mxu1 %vm158_vm1, %v12376_v32  ;;  %8913 = vmatprep.mubr.msk.f32.mxu0 %vm158_vm1, %v7373_v28  ;;  %v7389_v28 = vld [vmem:[%s12291_s0 + $0x151] sm:$0xff]  ;;  %v12392_v32 = vld [vmem:[#allocation32_spill] sm:$0xff] }
 0x159   :  { %8475 = vmatmul.mubr.msk.f32.gmra.mrb[42].mxu1 %vm158_vm1, %v12377_v36  ;;  %8914 = vmatmul.mubr.msk.f32.gmra.mrb[8].mxu0 %vm158_vm1, %v7374_v34  ;;  %v7390_v34 = vld [vmem:[%s12291_s0 + $0x159] sm:$0xff]  ;;  %v12393_v36 = vld [vmem:[#allocation33_spill] sm:$0xff] }
 0x15a   :  { %8477 = vmatprep.mubr.msk.f32.mxu1 %vm158_vm1, %v12378_v8  ;;  %8916 = vmatprep.mubr.msk.f32.mxu0 %vm158_vm1, %v7375_v4  ;;  %v7391_v4 = vld [vmem:[%s12291_s0 + $0x169] sm:$0xff] }
 0x15b   :  { %v12394_v8 = vld [vmem:[#allocation34_spill] sm:$0xff] }
 0x15d   :  { %8478 = vmatmul.mubr.msk.f32.gmra.mrb[44].mxu1 %vm158_vm1, %v12379_v40  ;;  %8917 = vmatmul.mubr.msk.f32.gmra.mrb[10].mxu0 %vm158_vm1, %v7376_v27  ;;  %v7392_v27 = vld [vmem:[%s12291_s0 + $0x171] sm:$0xff] }
 0x15e   :  { %8480 = vmatprep.mubr.msk.f32.mxu1 %vm158_vm1, %v12380_v44  ;;  %8919 = vmatprep.mubr.msk.f32.mxu0 %vm158_vm1, %v7377_v53  ;;  %v7393_v53 = vld [vmem:[%s12291_s0 + $0x181] sm:$0xff]  ;;  %v12395_v40 = vld [vmem:[#allocation35_spill] sm:$0xff] }
 0x15f   :  { %v12396_v44 = vld [vmem:[#allocation36_spill] sm:$0xff] }
 0x161   :  { %8481 = vmatmul.mubr.msk.f32.gmra.mrb[46].mxu1 %vm158_vm1, %v12381_v52  ;;  %8920 = vmatmul.mubr.msk.f32.gmra.mrb[12].mxu0 %vm158_vm1, %v7378_v45  ;;  %v7394_v45 = vld [vmem:[%s12291_s0 + $0x189] sm:$0xff]  ;;  %v7395_v52 = vld [vmem:[%s12291_s0 + $0x199] sm:$0xff] }
 0x162   :  { %8483 = vmatprep.mubr.msk.f32.mxu1 %vm158_vm1, %v12382_v54  ;;  %8922 = vmatprep.mubr.msk.f32.mxu0 %vm158_vm1, %v7379_v50  ;;  %v6849_v50 = vld [vmem:[%s12291_s0 + $0x18] sm:$0xff]  ;;  %v6850_v54 = vld [vmem:[%s12291_s0 + $0x20] sm:$0xff] }
 0x165   :  { %8484 = vmatmul.mubr.msk.f32.gmra.mrb[48].mxu1 %vm158_vm1, %v12383_v60  ;;  %8923 = vmatmul.mubr.msk.f32.gmra.mrb[14].mxu0 %vm158_vm1, %v7380_v56  ;;  %v7396_v56 = vld [vmem:[%s12291_s0 + $0x1a1] sm:$0xff]  ;;  %v6852_v60 = vld [vmem:[%s12291_s0 + $0x38] sm:$0xff] }
 0x166   :  { %8486 = vmatprep.mubr.msk.f32.mxu1 %vm158_vm1, %v12384_v62  ;;  %8925 = vmatprep.mubr.msk.f32.mxu0 %vm158_vm1, %v7381_v58  ;;  %v6851_v58 = vld [vmem:[%s12291_s0 + $0x30] sm:$0xff] }
 0x167   :  { %v11347_v62 = vld [vmem:[%s12291_s0 + $0x1e9] sm:$0xff] }
 0x169   :  { %8487 = vmatmul.mubr.msk.f32.gmra.mrb[50].mxu1 %vm158_vm1, %v12385_v5  ;;  %8926 = vmatmul.mubr.msk.f32.gmra.mrb[16].mxu0 %vm158_vm1, %v7382_v0  ;;  %v6853_v0 = vld [vmem:[%s12291_s0 + $0x48] sm:$0xff]  ;;  %v9617_v5 = vld [vmem:[%s12292_s1 + $0x10] sm:$0xf] }
 0x16a   :  { %8489 = vmatprep.mubr.msk.f32.mxu1 %vm158_vm1, %v12386_v7  ;;  %8928 = vmatprep.mubr.msk.f32.mxu0 %vm158_vm1, %v7383_v3  ;;  %v11355_v3 = vld [vmem:[%s12291_s0 + $0x1f9] sm:$0xff]  ;;  %v6854_v7 = vld [vmem:[%s12291_s0 + $0x50] sm:$0xff] }
 0x16d   :  { %8490 = vmatmul.mubr.msk.f32.gmra.mrb[52].mxu1 %vm158_vm1, %v12387_v13  ;;  %8929 = vmatmul.mubr.msk.f32.gmra.mrb[18].mxu0 %vm158_vm1, %v7384_v9  ;;  %v11373_v9 = vld [vmem:[%s12291_s0 + $0x201] sm:$0xff]  ;;  %v11381_v13 = vld [vmem:[%s12291_s0 + $0x211] sm:$0xff] }
 0x16e   :  { %8492 = vmatprep.mubr.msk.f32.mxu1 %vm158_vm1, %v12388_v15  ;;  %8931 = vmatprep.mubr.msk.f32.mxu0 %vm158_vm1, %v7385_v11  ;;  %v6855_v11 = vld [vmem:[%s12291_s0 + $0x60] sm:$0xff]  ;;  %v6856_v15 = vld [vmem:[%s12291_s0 + $0x68] sm:$0xff] }
 0x171   :  { %8493 = vmatmul.mubr.msk.f32.gmra.mrb[54].mxu1 %vm158_vm1, %v12389_v21  ;;  %8932 = vmatmul.mubr.msk.f32.gmra.mrb[20].mxu0 %vm158_vm1, %v7386_v17  ;;  %v11395_v17 = vld [vmem:[%s12291_s0 + $0x219] sm:$0xff]  ;;  %v11403_v21 = vld [vmem:[%s12291_s0 + $0x229] sm:$0xff] }
 0x172   :  { %8495 = vmatprep.mubr.msk.f32.mxu1 %vm158_vm1, %v12390_v23  ;;  %8934 = vmatprep.mubr.msk.f32.mxu0 %vm158_vm1, %v7387_v19  ;;  %v6857_v19 = vld [vmem:[%s12291_s0 + $0x78] sm:$0xff]  ;;  %v6858_v23 = vld [vmem:[%s12291_s0 + $0x80] sm:$0xff] }
 0x175   :  { %8496 = vmatmul.mubr.msk.f32.gmra.mrb[56].mxu1 %vm158_vm1, %v12391_v30  ;;  %8935 = vmatmul.mubr.msk.f32.gmra.mrb[22].mxu0 %vm158_vm1, %v7388_v25  ;;  %v11417_v25 = vld [vmem:[%s12291_s0 + $0x231] sm:$0xff]  ;;  %v11425_v30 = vld [vmem:[%s12291_s0 + $0x241] sm:$0xff] }
 0x176   :  { %8498 = vmatprep.mubr.msk.f32.mxu1 %vm158_vm1, %v12392_v32  ;;  %8937 = vmatprep.mubr.msk.f32.mxu0 %vm158_vm1, %v7389_v28  ;;  %v6859_v28 = vld [vmem:[%s12291_s0 + $0x90] sm:$0xff]  ;;  %v6860_v32 = vld [vmem:[%s12291_s0 + $0x98] sm:$0xff] }
 0x179   :  { %8499 = vmatmul.mubr.msk.f32.gmra.mrb[58].mxu1 %vm158_vm1, %v12393_v36  ;;  %8938 = vmatmul.mubr.msk.f32.gmra.mrb[24].mxu0 %vm158_vm1, %v7390_v34  ;;  %v11439_v34 = vld [vmem:[%s12291_s0 + $0x249] sm:$0xff]  ;;  %v11447_v36 = vld [vmem:[%s12291_s0 + $0x259] sm:$0xff] }
 0x17a   :  { %8501 = vmatprep.mubr.msk.f32.mxu1 %vm158_vm1, %v12394_v8  ;;  %8940 = vmatprep.mubr.msk.f32.mxu0 %vm158_vm1, %v7391_v4  ;;  %v6861_v4 = vld [vmem:[%s12291_s0 + $0xa8] sm:$0xff]  ;;  %v6862_v8 = vld [vmem:[%s12291_s0 + $0xb0] sm:$0xff] }
 0x17d   :  { %8502 = vmatmul.mubr.msk.f32.gmra.mrb[60].mxu1 %vm158_vm1, %v12395_v40  ;;  %8941 = vmatmul.mubr.msk.f32.gmra.mrb[26].mxu0 %vm158_vm1, %v7392_v27  ;;  %v11461_v27 = vld [vmem:[%s12291_s0 + $0x261] sm:$0xff]  ;;  %v11469_v40 = vld [vmem:[%s12291_s0 + $0x271] sm:$0xff] }
 0x17e   :  { %8504 = vmatprep.mubr.msk.f32.mxu1 %vm158_vm1, %v12396_v44  ;;  %8943 = vmatprep.mubr.msk.f32.mxu0 %vm158_vm1, %v7393_v53  ;;  %v6863_v53 = vld [vmem:[%s12291_s0 + $0xc0] sm:$0xff]  ;;  %v6864_v44 = vld [vmem:[%s12291_s0 + $0xc8] sm:$0xff] }
 0x181   :  { %8505 = vmatmul.mubr.msk.f32.gmra.mrb[62].mxu1 %vm158_vm1, %v10661_v51  ;;  %8944 = vmatmul.mubr.msk.f32.gmra.mrb[28].mxu0 %vm158_vm1, %v7394_v45  ;;  %v11334_v51 = vld [vmem:[%s12291_s0 + $0x1e1] sm:$0xff]  ;;  %v11483_v45 = vld [vmem:[%s12291_s0 + $0x279] sm:$0xff] }
 0x182   :  { %8509 = vmatprep.mubr.msk.f32.mxu1 %vm158_vm1, %v6849_v50  ;;  %8946 = vmatprep.mubr.msk.f32.mxu0 %vm158_vm1, %v7395_v52  ;;  %v6865_v50 = vld [vmem:[%s12291_s0 + $0xd8] sm:$0xff]  ;;  %v11491_v52 = vld [vmem:[%s12291_s0 + $0x289] sm:$0xff] }
 0x185   :  { %8510 = vmatmul.mubr.msk.f32.vlgmr.msra.gmra.mrb[0].mxu1 %vm158_vm1, %v6850_v54  ;;  %8947 = vmatmul.mubr.msk.f32.gmra.mrb[30].mxu0 %vm158_vm1, %v7396_v56  ;;  %v6866_v54 = vld [vmem:[%s12291_s0 + $0xe0] sm:$0xff]  ;;  %v11505_v56 = vld [vmem:[%s12291_s0 + $0x291] sm:$0xff] }
 0x186   :  { %8512 = vmatprep.mubr.msk.f32.mxu1 %vm158_vm1, %v6851_v58  ;;  %8949 = vmatprep.mubr.msk.f32.mxu0 %vm158_vm1, %v11334_v51  ;;  %v6867_v58 = vld [vmem:[%s12291_s0 + $0xf0] sm:$0xff] }
 0x187   :  { %9101 = vmatpush3.msk.msra.mxu1 %vm351_vm0, %v9617_v5  ;;  %v11527_v5 = vld [vmem:[%s12291_s0 + $0x2a9] sm:$0xff] }
 0x189   :  { %8513 = vmatmul.mubr.msk.f32.gmra.mrb[2].mxu1 %vm158_vm1, %v6852_v60  ;;  %8950 = vmatmul.mubr.msk.f32.gmra.mrb[32].mxu0 %vm158_vm1, %v11347_v62  ;;  %v11513_v60 = vld [vmem:[%s12291_s0 + $0x2a1] sm:$0xff] }
 0x18a   :  { %8515 = vmatprep.mubr.msk.f32.mxu1 %vm158_vm1, %v6853_v0  ;;  %8952 = vmatprep.mubr.msk.f32.mxu0 %vm158_vm1, %v11355_v3  ;;  %v6868_v0 = vld [vmem:[%s12291_s0 + $0xf8] sm:$0xff] }
 0x18d   :  { %8516 = vmatmul.mubr.msk.f32.gmra.mrb[4].mxu1 %vm158_vm1, %v6854_v7  ;;  %8953 = vmatmul.mubr.msk.f32.gmra.mrb[34].mxu0 %vm158_vm1, %v11373_v9  ;;  %v6869_v7 = vld [vmem:[%s12291_s0 + $0x108] sm:$0xff] }
 0x18e   :  { %8518 = vmatprep.mubr.msk.f32.mxu1 %vm158_vm1, %v6855_v11  ;;  %8955 = vmatprep.mubr.msk.f32.mxu0 %vm158_vm1, %v11381_v13  ;;  %v11535_v11 = vld [vmem:[%s12291_s0 + $0x2b9] sm:$0xff] }
 0x191   :  { %8519 = vmatmul.mubr.msk.f32.gmra.mrb[6].mxu1 %vm158_vm1, %v6856_v15  ;;  %8956 = vmatmul.mubr.msk.f32.gmra.mrb[36].mxu0 %vm158_vm1, %v11395_v17  ;;  %v6870_v15 = vld [vmem:[%s12291_s0 + $0x110] sm:$0xff] }
 0x192   :  { %8521 = vmatprep.mubr.msk.f32.mxu1 %vm158_vm1, %v6857_v19  ;;  %8958 = vmatprep.mubr.msk.f32.mxu0 %vm158_vm1, %v11403_v21  ;;  %v11549_v19 = vld [vmem:[%s12291_s0 + $0x2c1] sm:$0xff] }
 0x195   :  { %8522 = vmatmul.mubr.msk.f32.gmra.mrb[8].mxu1 %vm158_vm1, %v6858_v23  ;;  %8959 = vmatmul.mubr.msk.f32.gmra.mrb[38].mxu0 %vm158_vm1, %v11417_v25  ;;  %v6871_v23 = vld [vmem:[%s12291_s0 + $0x120] sm:$0xff] }
 0x196   :  { %8524 = vmatprep.mubr.msk.f32.mxu1 %vm158_vm1, %v6859_v28  ;;  %8961 = vmatprep.mubr.msk.f32.mxu0 %vm158_vm1, %v11425_v30  ;;  %v11557_v28 = vld [vmem:[%s12291_s0 + $0x2d1] sm:$0xff] }
 0x199   :  { %8525 = vmatmul.mubr.msk.f32.gmra.mrb[10].mxu1 %vm158_vm1, %v6860_v32  ;;  %8962 = vmatmul.mubr.msk.f32.gmra.mrb[40].mxu0 %vm158_vm1, %v11439_v34  ;;  %v6872_v32 = vld [vmem:[%s12291_s0 + $0x128] sm:$0xff] }
 0x19a   :  { %8527 = vmatprep.mubr.msk.f32.mxu1 %vm158_vm1, %v6861_v4  ;;  %8964 = vmatprep.mubr.msk.f32.mxu0 %vm158_vm1, %v11447_v36  ;;  %v11571_v4 = vld [vmem:[%s12291_s0 + $0x2d9] sm:$0xff] }
 0x19d   :  { %8528 = vmatmul.mubr.msk.f32.gmra.mrb[12].mxu1 %vm158_vm1, %v6862_v8  ;;  %8965 = vmatmul.mubr.msk.f32.gmra.mrb[42].mxu0 %vm158_vm1, %v11461_v27  ;;  %v6873_v8 = vld [vmem:[%s12291_s0 + $0x138] sm:$0xff] }
 0x19e   :  { %8530 = vmatprep.mubr.msk.f32.mxu1 %vm158_vm1, %v6863_v53  ;;  %8967 = vmatprep.mubr.msk.f32.mxu0 %vm158_vm1, %v11469_v40  ;;  %v11579_v53 = vld [vmem:[%s12291_s0 + $0x2e9] sm:$0xff] }
 0x1a1   :  { %8531 = vmatmul.mubr.msk.f32.gmra.mrb[14].mxu1 %vm158_vm1, %v6864_v44  ;;  %8968 = vmatmul.mubr.msk.f32.gmra.mrb[44].mxu0 %vm158_vm1, %v11483_v45  ;;  %v6874_v44 = vld [vmem:[%s12291_s0 + $0x140] sm:$0xff] }
 0x1a2   :  { %8533 = vmatprep.mubr.msk.f32.mxu1 %vm158_vm1, %v6865_v50  ;;  %8970 = vmatprep.mubr.msk.f32.mxu0 %vm158_vm1, %v11491_v52  ;;  %v11593_v50 = vld [vmem:[%s12291_s0 + $0x2f1] sm:$0xff] }
 0x1a5   :  { %8534 = vmatmul.mubr.msk.f32.gmra.mrb[16].mxu1 %vm158_vm1, %v6866_v54  ;;  %8971 = vmatmul.mubr.msk.f32.gmra.mrb[46].mxu0 %vm158_vm1, %v11505_v56  ;;  %v6875_v54 = vld [vmem:[%s12291_s0 + $0x150] sm:$0xff] }
 0x1a6   :  { %8536 = vmatprep.mubr.msk.f32.mxu1 %vm158_vm1, %v6867_v58  ;;  %8973 = vmatprep.mubr.msk.f32.mxu0 %vm158_vm1, %v11513_v60  ;;  %v11601_v58 = vld [vmem:[%s12291_s0 + $0x301] sm:$0xff] }
 0x1a9   :  { %8537 = vmatmul.mubr.msk.f32.gmra.mrb[18].mxu1 %vm158_vm1, %v6868_v0  ;;  %8974 = vmatmul.mubr.msk.f32.gmra.mrb[48].mxu0 %vm158_vm1, %v11527_v5  ;;  %v6876_v0 = vld [vmem:[%s12291_s0 + $0x158] sm:$0xff] }
 0x1aa   :  { %8539 = vmatprep.mubr.msk.f32.mxu1 %vm158_vm1, %v6869_v7  ;;  %8976 = vmatprep.mubr.msk.f32.mxu0 %vm158_vm1, %v11535_v11  ;;  %v11615_v7 = vld [vmem:[%s12291_s0 + $0x309] sm:$0xff] }
 0x1ad   :  { %8540 = vmatmul.mubr.msk.f32.gmra.mrb[20].mxu1 %vm158_vm1, %v6870_v15  ;;  %8977 = vmatmul.mubr.msk.f32.gmra.mrb[50].mxu0 %vm158_vm1, %v11549_v19  ;;  %v6877_v15 = vld [vmem:[%s12291_s0 + $0x168] sm:$0xff] }
 0x1ae   :  { %8542 = vmatprep.mubr.msk.f32.mxu1 %vm158_vm1, %v6871_v23  ;;  %8979 = vmatprep.mubr.msk.f32.mxu0 %vm158_vm1, %v11557_v28  ;;  %v11623_v23 = vld [vmem:[%s12291_s0 + $0x319] sm:$0xff] }
 0x1b1   :  { %8543 = vmatmul.mubr.msk.f32.gmra.mrb[22].mxu1 %vm158_vm1, %v6872_v32  ;;  %8980 = vmatmul.mubr.msk.f32.gmra.mrb[52].mxu0 %vm158_vm1, %v11571_v4  ;;  %v6878_v32 = vld [vmem:[%s12291_s0 + $0x170] sm:$0xff] }
 0x1b2   :  { %8545 = vmatprep.mubr.msk.f32.mxu1 %vm158_vm1, %v6873_v8  ;;  %8982 = vmatprep.mubr.msk.f32.mxu0 %vm158_vm1, %v11579_v53  ;;  %v11637_v8 = vld [vmem:[%s12291_s0 + $0x321] sm:$0xff] }
 0x1b3   :  { %12397 = vst [vmem:[#allocation5_spill] sm:$0xff] %v11637_v8 }
 0x1b5   :  { %8546 = vmatmul.mubr.msk.f32.gmra.mrb[24].mxu1 %vm158_vm1, %v6874_v44  ;;  %8983 = vmatmul.mubr.msk.f32.gmra.mrb[54].mxu0 %vm158_vm1, %v11593_v50  ;;  %v11642_v44 = vld [vmem:[%s12291_s0 + $0x331] sm:$0xff] }
 0x1b6   :  { %8548 = vmatprep.mubr.msk.f32.mxu1 %vm158_vm1, %v6875_v54  ;;  %8985 = vmatprep.mubr.msk.f32.mxu0 %vm158_vm1, %v11601_v58  ;;  %12398 = vst [vmem:[#allocation6_spill] sm:$0xff] %v11642_v44  ;;  %v12399_v54 = vld [vmem:[#allocation37_spill] sm:$0xff] }
 0x1b9   :  { %8549 = vmatmul.mubr.msk.f32.gmra.mrb[26].mxu1 %vm158_vm1, %v6876_v0  ;;  %8986 = vmatmul.mubr.msk.f32.gmra.mrb[56].mxu0 %vm158_vm1, %v11615_v7  ;;  %v11654_v0 = vld [vmem:[%s12291_s0 + $0x339] sm:$0xff] }
 0x1ba   :  { %8551 = vmatprep.mubr.msk.f32.mxu1 %vm158_vm1, %v6877_v15  ;;  %8988 = vmatprep.mubr.msk.f32.mxu0 %vm158_vm1, %v11623_v23  ;;  %v6881_v15 = vld [vmem:[%s12291_s0 + $0x1c8] sm:$0xff] }
 0x1bd   :  { %8552 = vmatmul.mubr.msk.f32.gmra.mrb[28].mxu1 %vm158_vm1, %v6878_v32  ;;  %8989 = vmatmul.mubr.msk.f32.gmra.mrb[58].mxu0 %vm158_vm1, %v11637_v8  ;;  %v7427_v32 = vld [vmem:[%s12291_s0 + $0x349] sm:$0xff]  ;;  %v7494_v8 = vld [vmem:[%s12291_s0 + $0x32] sm:$0xff] }
 0x1be   :  { %8554 = vmatprep.mubr.msk.f32.mxu1 %vm158_vm1, %v12399_v54  ;;  %8991 = vmatprep.mubr.msk.f32.mxu0 %vm158_vm1, %v11642_v44  ;;  %v6882_v54 = vld [vmem:[%s12291_s0 + $0x1d0] sm:$0xff] }
 0x1bf   :  { %v7428_v44 = vld [vmem:[%s12291_s0 + $0x351] sm:$0xff] }
 0x1c1   :  { %8555 = vmatmul.mubr.msk.f32.gmra.mrb[30].mxu1 %vm158_vm1, %v10960_v49  ;;  %8992 = vmatmul.mubr.msk.f32.gmra.mrb[60].mxu0 %vm158_vm1, %v11654_v0  ;;  %v7495_v49 = vld [vmem:[%s12291_s0 + $0x3a] sm:$0xff] }
 0x1c2   :  { %8557 = vmatprep.mubr.msk.f32.mxu1 %vm158_vm1, %v6881_v15  ;;  %8994 = vmatprep.mubr.msk.f32.mxu0 %vm158_vm1, %v7427_v32  ;;  %v7496_v15 = vld [vmem:[%s12291_s0 + $0x4a] sm:$0xff]  ;;  %v7554_v32 = vld [vmem:[%s12291_s0 + $0x332] sm:$0xff] }
 0x1c5   :  { %8558 = vmatmul.mubr.msk.f32.gmra.mrb[32].mxu1 %vm158_vm1, %v6882_v54  ;;  %8995 = vmatmul.mubr.msk.f32.gmra.mrb[62].mxu0 %vm158_vm1, %v7428_v44  ;;  %v12400_v44 = vld [vmem:[#allocation5_spill] sm:$0xff]  ;;  %v7555_v54 = vld [vmem:[%s12291_s0 + $0x33a] sm:$0xff] }
 0x1c6   :  { %8560 = vmatprep.mubr.msk.f32.mxu1 %vm158_vm1, %v10695_v59  ;;  %8999 = vmatprep.mubr.msk.f32.mxu0 %vm158_vm1, %v7494_v8  ;;  %v7497_v59 = vld [vmem:[%s12291_s0 + $0x52] sm:$0xff]  ;;  %v7498_v8 = vld [vmem:[%s12291_s0 + $0x62] sm:$0xff] }
 0x1c9   :  { %8561 = vmatmul.mubr.msk.f32.gmra.mrb[34].mxu1 %vm158_vm1, %v10712_v38  ;;  %9000 = vmatmul.mubr.msk.f32.vlgmr.msra.gmra.mrb[0].mxu0 %vm158_vm1, %v7495_v49  ;;  %v7499_v38 = vld [vmem:[%s12291_s0 + $0x6a] sm:$0xff] }
 0x1ca   :  { %8563 = vmatprep.mubr.msk.f32.mxu1 %vm158_vm1, %v10719_v55  ;;  %9002 = vmatprep.mubr.msk.f32.mxu0 %vm158_vm1, %v7496_v15  ;;  %v7500_v55 = vld [vmem:[%s12291_s0 + $0x7a] sm:$0xff]  ;;  %v7556_v49 = vld [vmem:[%s12291_s0 + $0x34a] sm:$0xff] }
 0x1cd   :  { %8564 = vmatmul.mubr.msk.f32.gmra.mrb[36].mxu1 %vm158_vm1, %v10734_v48  ;;  %9003 = vmatmul.mubr.msk.f32.gmra.mrb[2].mxu0 %vm158_vm1, %v7497_v59  ;;  %v7501_v48 = vld [vmem:[%s12291_s0 + $0x82] sm:$0xff] }
 0x1ce   :  { %8566 = vmatprep.mubr.msk.f32.mxu1 %vm158_vm1, %v10739_v57  ;;  %9005 = vmatprep.mubr.msk.f32.mxu0 %vm158_vm1, %v7498_v8  ;;  %v7502_v57 = vld [vmem:[%s12291_s0 + $0x92] sm:$0xff] }
 0x1d1   :  { %8567 = vmatmul.mubr.msk.f32.gmra.mrb[38].mxu1 %vm158_vm1, %v10752_v61  ;;  %9006 = vmatmul.mubr.msk.f32.gmra.mrb[4].mxu0 %vm158_vm1, %v7499_v38  ;;  %v7503_v61 = vld [vmem:[%s12291_s0 + $0x9a] sm:$0xff] }
 0x1d2   :  { %8569 = vmatprep.mubr.msk.f32.mxu1 %vm158_vm1, %v10757_v63  ;;  %9008 = vmatprep.mubr.msk.f32.mxu0 %vm158_vm1, %v7500_v55  ;;  %v7504_v63 = vld [vmem:[%s12291_s0 + $0xaa] sm:$0xff] }
 0x1d5   :  { %8570 = vmatmul.mubr.msk.f32.gmra.mrb[40].mxu1 %vm158_vm1, %v10770_v6  ;;  %9009 = vmatmul.mubr.msk.f32.gmra.mrb[6].mxu0 %vm158_vm1, %v7501_v48  ;;  %v7505_v6 = vld [vmem:[%s12291_s0 + $0xb2] sm:$0xff] }
 0x1d6   :  { %8572 = vmatprep.mubr.msk.f32.mxu1 %vm158_vm1, %v10775_v10  ;;  %9011 = vmatprep.mubr.msk.f32.mxu0 %vm158_vm1, %v7502_v57  ;;  %v7506_v10 = vld [vmem:[%s12291_s0 + $0xc2] sm:$0xff] }
 0x1d9   :  { %8573 = vmatmul.mubr.msk.f32.gmra.mrb[42].mxu1 %vm158_vm1, %v10788_v14  ;;  %9012 = vmatmul.mubr.msk.f32.gmra.mrb[8].mxu0 %vm158_vm1, %v7503_v61  ;;  %v7507_v14 = vld [vmem:[%s12291_s0 + $0xca] sm:$0xff] }
 0x1da   :  { %8575 = vmatprep.mubr.msk.f32.mxu1 %vm158_vm1, %v10793_v18  ;;  %9014 = vmatprep.mubr.msk.f32.mxu0 %vm158_vm1, %v7504_v63  ;;  %v7508_v18 = vld [vmem:[%s12291_s0 + $0xda] sm:$0xff] }
 0x1dd   :  { %8576 = vmatmul.mubr.msk.f32.gmra.mrb[44].mxu1 %vm158_vm1, %v10806_v22  ;;  %9015 = vmatmul.mubr.msk.f32.gmra.mrb[10].mxu0 %vm158_vm1, %v7505_v6  ;;  %v7509_v22 = vld [vmem:[%s12291_s0 + $0xe2] sm:$0xff] }
 0x1de   :  { %8578 = vmatprep.mubr.msk.f32.mxu1 %vm158_vm1, %v10811_v26  ;;  %9017 = vmatprep.mubr.msk.f32.mxu0 %vm158_vm1, %v7506_v10  ;;  %v7510_v26 = vld [vmem:[%s12291_s0 + $0xf2] sm:$0xff] }
 0x1e1   :  { %8579 = vmatmul.mubr.msk.f32.gmra.mrb[46].mxu1 %vm158_vm1, %v10824_v31  ;;  %9018 = vmatmul.mubr.msk.f32.gmra.mrb[12].mxu0 %vm158_vm1, %v7507_v14  ;;  %v7511_v31 = vld [vmem:[%s12291_s0 + $0xfa] sm:$0xff] }
 0x1e2   :  { %8581 = vmatprep.mubr.msk.f32.mxu1 %vm158_vm1, %v10829_v35  ;;  %9020 = vmatprep.mubr.msk.f32.mxu0 %vm158_vm1, %v7508_v18  ;;  %v7512_v35 = vld [vmem:[%s12291_s0 + $0x10a] sm:$0xff] }
 0x1e5   :  { %8582 = vmatmul.mubr.msk.f32.gmra.mrb[48].mxu1 %vm158_vm1, %v10842_v39  ;;  %9021 = vmatmul.mubr.msk.f32.gmra.mrb[14].mxu0 %vm158_vm1, %v7509_v22  ;;  %v7513_v39 = vld [vmem:[%s12291_s0 + $0x112] sm:$0xff] }
 0x1e6   :  { %8584 = vmatprep.mubr.msk.f32.mxu1 %vm158_vm1, %v10847_v42  ;;  %9023 = vmatprep.mubr.msk.f32.mxu0 %vm158_vm1, %v7510_v26  ;;  %v7514_v42 = vld [vmem:[%s12291_s0 + $0x122] sm:$0xff] }
 0x1e9   :  { %8585 = vmatmul.mubr.msk.f32.gmra.mrb[50].mxu1 %vm158_vm1, %v10860_v43  ;;  %9024 = vmatmul.mubr.msk.f32.gmra.mrb[16].mxu0 %vm158_vm1, %v7511_v31  ;;  %v7515_v43 = vld [vmem:[%s12291_s0 + $0x12a] sm:$0xff] }
 0x1ea   :  { %8587 = vmatprep.mubr.msk.f32.mxu1 %vm158_vm1, %v10865_v46  ;;  %9026 = vmatprep.mubr.msk.f32.mxu0 %vm158_vm1, %v7512_v35  ;;  %v7516_v46 = vld [vmem:[%s12291_s0 + $0x13a] sm:$0xff] }
 0x1ed   :  { %8588 = vmatmul.mubr.msk.f32.gmra.mrb[52].mxu1 %vm158_vm1, %v10878_v37  ;;  %9027 = vmatmul.mubr.msk.f32.gmra.mrb[18].mxu0 %vm158_vm1, %v7513_v39  ;;  %v7517_v37 = vld [vmem:[%s12291_s0 + $0x142] sm:$0xff] }
 0x1ee   :  { %8590 = vmatprep.mubr.msk.f32.mxu1 %vm158_vm1, %v10883_v41  ;;  %9029 = vmatprep.mubr.msk.f32.mxu0 %vm158_vm1, %v7514_v42  ;;  %v7518_v41 = vld [vmem:[%s12291_s0 + $0x152] sm:$0xff] }
 0x1f1   :  { %8591 = vmatmul.mubr.msk.f32.gmra.mrb[54].mxu1 %vm158_vm1, %v10896_v29  ;;  %9030 = vmatmul.mubr.msk.f32.gmra.mrb[20].mxu0 %vm158_vm1, %v7515_v43  ;;  %v7519_v29 = vld [vmem:[%s12291_s0 + $0x15a] sm:$0xff] }
 0x1f2   :  { %8593 = vmatprep.mubr.msk.f32.mxu1 %vm158_vm1, %v10901_v33  ;;  %9032 = vmatprep.mubr.msk.f32.mxu0 %vm158_vm1, %v7516_v46  ;;  %v7520_v33 = vld [vmem:[%s12291_s0 + $0x16a] sm:$0xff] }
 0x1f5   :  { %8594 = vmatmul.mubr.msk.f32.gmra.mrb[56].mxu1 %vm158_vm1, %v10914_v20  ;;  %9033 = vmatmul.mubr.msk.f32.gmra.mrb[22].mxu0 %vm158_vm1, %v7517_v37  ;;  %v7521_v20 = vld [vmem:[%s12291_s0 + $0x172] sm:$0xff]  ;;  %v9642_v37 = vmov 0.0  }
 0x1f6   :  { %8596 = vmatprep.mubr.msk.f32.mxu1 %vm158_vm1, %v10919_v24  ;;  %9035 = vmatprep.mubr.msk.f32.mxu0 %vm158_vm1, %v7518_v41  ;;  %v7522_v24 = vld [vmem:[%s12291_s0 + $0x182] sm:$0xff] }
 0x1f7   :  { %9095 = vmatprep.subr.mxu1 %v9642_v37 }
 0x1f9   :  { %8597 = vmatmul.mubr.msk.f32.gmra.mrb[58].mxu1 %vm158_vm1, %v10932_v12  ;;  %9036 = vmatmul.mubr.msk.f32.gmra.mrb[24].mxu0 %vm158_vm1, %v7519_v29  ;;  %v7523_v12 = vld [vmem:[%s12291_s0 + $0x18a] sm:$0xff]  ;;  %v6554_v29 = vld [vmem:[%s12294_s3] sm:$0xff] }
 0x1fa   :  { %8599 = vmatprep.mubr.msk.f32.mxu1 %vm158_vm1, %v10937_v16  ;;  %9038 = vmatprep.mubr.msk.f32.mxu0 %vm158_vm1, %v7520_v33  ;;  %v7524_v16 = vld [vmem:[%s12291_s0 + $0x19a] sm:$0xff] }
 0x1fd   :  { %8600 = vmatmul.mubr.msk.f32.gmra.mrb[60].mxu1 %vm158_vm1, %v10955_v2  ;;  %9039 = vmatmul.mubr.msk.f32.gmra.mrb[26].mxu0 %vm158_vm1, %v7521_v20  ;;  %v7525_v2 = vld [vmem:[%s12291_s0 + $0x1a2] sm:$0xff] }
 0x1fe   :  { %8602 = vmatprep.mubr.msk.f32.mxu1 %vm158_vm1, %v11097_v1  ;;  %9041 = vmatprep.mubr.msk.f32.mxu0 %vm158_vm1, %v7522_v24  ;;  %v7526_v1 = vld [vmem:[%s12291_s0 + $0x1e2] sm:$0xff] }
 0x201   :  { %8603 = vmatmul.mubr.msk.f32.gmra.mrb[62].mxu1 %vm158_vm1, %v11110_v47  ;;  %9042 = vmatmul.mubr.msk.f32.gmra.mrb[28].mxu0 %vm158_vm1, %v7523_v12  ;;  %v7527_v47 = vld [vmem:[%s12291_s0 + $0x1ea] sm:$0xff] }
 0x202   :  { %8658 = vmatprep.mubr.msk.f32.mxu1 %vm158_vm1, %v11334_v51  ;;  %9044 = vmatprep.mubr.msk.f32.mxu0 %vm158_vm1, %v7524_v16  ;;  %v7528_v51 = vld [vmem:[%s12291_s0 + $0x1fa] sm:$0xff] }
 0x205   :  { %8659 = vmatmul.mubr.msk.f32.vlgmr.msra.gmra.mrb[34].mxu1 %vm158_vm1, %v11347_v62  ;;  %9045 = vmatmul.mubr.msk.f32.gmra.mrb[30].mxu0 %vm158_vm1, %v7525_v2  ;;  %v7529_v62 = vld [vmem:[%s12291_s0 + $0x202] sm:$0xff] }
 0x206   :  { %8661 = vmatprep.mubr.msk.f32.mxu1 %vm158_vm1, %v11355_v3  ;;  %9047 = vmatprep.mubr.msk.f32.mxu0 %vm158_vm1, %v7526_v1  ;;  %v7530_v3 = vld [vmem:[%s12291_s0 + $0x212] sm:$0xff] }
 0x207   :  { %9096 = vmatpush3.msra.mxu1 %v6554_v29 }
 0x209   :  { %8662 = vmatmul.mubr.msk.f32.gmra.mrb[36].mxu1 %vm158_vm1, %v11373_v9  ;;  %9048 = vmatmul.mubr.msk.f32.gmra.mrb[32].mxu0 %vm158_vm1, %v7527_v47  ;;  %v7531_v9 = vld [vmem:[%s12291_s0 + $0x21a] sm:$0xff] }
 0x20a   :  { %8664 = vmatprep.mubr.msk.f32.mxu1 %vm158_vm1, %v11381_v13  ;;  %9050 = vmatprep.mubr.msk.f32.mxu0 %vm158_vm1, %v7528_v51  ;;  %v7532_v13 = vld [vmem:[%s12291_s0 + $0x22a] sm:$0xff] }
 0x20d   :  { %8665 = vmatmul.mubr.msk.f32.gmra.mrb[38].mxu1 %vm158_vm1, %v11395_v17  ;;  %9051 = vmatmul.mubr.msk.f32.gmra.mrb[34].mxu0 %vm158_vm1, %v7529_v62  ;;  %v7533_v17 = vld [vmem:[%s12291_s0 + $0x232] sm:$0xff] }
 0x20e   :  { %8667 = vmatprep.mubr.msk.f32.mxu1 %vm158_vm1, %v11403_v21  ;;  %9053 = vmatprep.mubr.msk.f32.mxu0 %vm158_vm1, %v7530_v3  ;;  %v7534_v21 = vld [vmem:[%s12291_s0 + $0x242] sm:$0xff] }
 0x211   :  { %8668 = vmatmul.mubr.msk.f32.gmra.mrb[40].mxu1 %vm158_vm1, %v11417_v25  ;;  %9054 = vmatmul.mubr.msk.f32.gmra.mrb[36].mxu0 %vm158_vm1, %v7531_v9  ;;  %v7535_v25 = vld [vmem:[%s12291_s0 + $0x24a] sm:$0xff] }
 0x212   :  { %8670 = vmatprep.mubr.msk.f32.mxu1 %vm158_vm1, %v11425_v30  ;;  %9056 = vmatprep.mubr.msk.f32.mxu0 %vm158_vm1, %v7532_v13  ;;  %v7536_v30 = vld [vmem:[%s12291_s0 + $0x25a] sm:$0xff] }
 0x215   :  { %8671 = vmatmul.mubr.msk.f32.gmra.mrb[42].mxu1 %vm158_vm1, %v11439_v34  ;;  %9057 = vmatmul.mubr.msk.f32.gmra.mrb[38].mxu0 %vm158_vm1, %v7533_v17  ;;  %v7537_v34 = vld [vmem:[%s12291_s0 + $0x262] sm:$0xff]  ;;  %v12113_v17 = vld [vmem:[%s12293_s2] ss:$0 sm:$0xff] }
 0x216   :  { %8673 = vmatprep.mubr.msk.f32.mxu1 %vm158_vm1, %v11447_v36  ;;  %9059 = vmatprep.mubr.msk.f32.mxu0 %vm158_vm1, %v7534_v21  ;;  %v7538_v36 = vld [vmem:[%s12291_s0 + $0x272] sm:$0xff] }
 0x219   :  { %8674 = vmatmul.mubr.msk.f32.gmra.mrb[44].mxu1 %vm158_vm1, %v11461_v27  ;;  %9060 = vmatmul.mubr.msk.f32.gmra.mrb[40].mxu0 %vm158_vm1, %v7535_v25  ;;  %v7539_v27 = vld [vmem:[%s12291_s0 + $0x27a] sm:$0xff] }
 0x21a   :  { %8676 = vmatprep.mubr.msk.f32.mxu1 %vm158_vm1, %v11469_v40  ;;  %9062 = vmatprep.mubr.msk.f32.mxu0 %vm158_vm1, %v7536_v30  ;;  %v7540_v40 = vld [vmem:[%s12291_s0 + $0x28a] sm:$0xff] }
 0x21d   :  { %8677 = vmatmul.mubr.msk.f32.gmra.mrb[46].mxu1 %vm158_vm1, %v11483_v45  ;;  %9063 = vmatmul.mubr.msk.f32.gmra.mrb[42].mxu0 %vm158_vm1, %v7537_v34  ;;  %v7541_v45 = vld [vmem:[%s12291_s0 + $0x292] sm:$0xff] }
 0x21e   :  { %8679 = vmatprep.mubr.msk.f32.mxu1 %vm158_vm1, %v11491_v52  ;;  %9065 = vmatprep.mubr.msk.f32.mxu0 %vm158_vm1, %v7538_v36  ;;  %v7542_v52 = vld [vmem:[%s12291_s0 + $0x2a2] sm:$0xff] }
 0x221   :  { %8680 = vmatmul.mubr.msk.f32.gmra.mrb[48].mxu1 %vm158_vm1, %v11505_v56  ;;  %9066 = vmatmul.mubr.msk.f32.gmra.mrb[44].mxu0 %vm158_vm1, %v7539_v27  ;;  %v7543_v56 = vld [vmem:[%s12291_s0 + $0x2aa] sm:$0xff] }
 0x222   :  { %8682 = vmatprep.mubr.msk.f32.mxu1 %vm158_vm1, %v11513_v60  ;;  %9068 = vmatprep.mubr.msk.f32.mxu0 %vm158_vm1, %v7540_v40  ;;  %v7544_v60 = vld [vmem:[%s12291_s0 + $0x2ba] sm:$0xff] }
 0x225   :  { %8683 = vmatmul.mubr.msk.f32.gmra.mrb[50].mxu1 %vm158_vm1, %v11527_v5  ;;  %9069 = vmatmul.mubr.msk.f32.gmra.mrb[46].mxu0 %vm158_vm1, %v7541_v45  ;;  %v7545_v5 = vld [vmem:[%s12291_s0 + $0x2c2] sm:$0xff] }
 0x226   :  { %8685 = vmatprep.mubr.msk.f32.mxu1 %vm158_vm1, %v11535_v11  ;;  %9071 = vmatprep.mubr.msk.f32.mxu0 %vm158_vm1, %v7542_v52  ;;  %v7546_v11 = vld [vmem:[%s12291_s0 + $0x2d2] sm:$0xff] }
 0x229   :  { %8686 = vmatmul.mubr.msk.f32.gmra.mrb[52].mxu1 %vm158_vm1, %v11549_v19  ;;  %9072 = vmatmul.mubr.msk.f32.gmra.mrb[48].mxu0 %vm158_vm1, %v7543_v56  ;;  %v7547_v19 = vld [vmem:[%s12291_s0 + $0x2da] sm:$0xff] }
 0x22a   :  { %8688 = vmatprep.mubr.msk.f32.mxu1 %vm158_vm1, %v11557_v28  ;;  %9074 = vmatprep.mubr.msk.f32.mxu0 %vm158_vm1, %v7544_v60  ;;  %v7548_v28 = vld [vmem:[%s12291_s0 + $0x2ea] sm:$0xff] }
 0x22d   :  { %8689 = vmatmul.mubr.msk.f32.gmra.mrb[54].mxu1 %vm158_vm1, %v11571_v4  ;;  %9075 = vmatmul.mubr.msk.f32.gmra.mrb[50].mxu0 %vm158_vm1, %v7545_v5  ;;  %v7549_v4 = vld [vmem:[%s12291_s0 + $0x2f2] sm:$0xff] }
 0x22e   :  { %8691 = vmatprep.mubr.msk.f32.mxu1 %vm158_vm1, %v11579_v53  ;;  %9077 = vmatprep.mubr.msk.f32.mxu0 %vm158_vm1, %v7546_v11  ;;  %v7550_v53 = vld [vmem:[%s12291_s0 + $0x302] sm:$0xff] }
 0x231   :  { %8692 = vmatmul.mubr.msk.f32.gmra.mrb[56].mxu1 %vm158_vm1, %v11593_v50  ;;  %9078 = vmatmul.mubr.msk.f32.gmra.mrb[52].mxu0 %vm158_vm1, %v7547_v19  ;;  %v7551_v50 = vld [vmem:[%s12291_s0 + $0x30a] sm:$0xff] }
 0x232   :  { %8694 = vmatprep.mubr.msk.f32.mxu1 %vm158_vm1, %v11601_v58  ;;  %9080 = vmatprep.mubr.msk.f32.mxu0 %vm158_vm1, %v7548_v28  ;;  %v7552_v58 = vld [vmem:[%s12291_s0 + $0x31a] sm:$0xff] }
 0x235   :  { %8695 = vmatmul.mubr.msk.f32.gmra.mrb[58].mxu1 %vm158_vm1, %v11615_v7  ;;  %9081 = vmatmul.mubr.msk.f32.gmra.mrb[54].mxu0 %vm158_vm1, %v7549_v4  ;;  %v12401_v7 = vld [vmem:[#allocation6_spill] sm:$0xff] }
 0x236   :  { %8697 = vmatprep.mubr.msk.f32.mxu1 %vm158_vm1, %v11623_v23  ;;  %9083 = vmatprep.mubr.msk.f32.mxu0 %vm158_vm1, %v7550_v53  ;;  %v7553_v23 = vld [vmem:[%s12291_s0 + $0x322] sm:$0xff] }
 0x239   :  { %8698 = vmatmul.mubr.msk.f32.gmra.mrb[60].mxu1 %vm158_vm1, %v12400_v44  ;;  %9084 = vmatmul.mubr.msk.f32.gmra.mrb[56].mxu0 %vm158_vm1, %v7551_v50 }
 0x23a   :  { %8700 = vmatprep.mubr.msk.f32.mxu1 %vm158_vm1, %v12401_v7  ;;  %9086 = vmatprep.mubr.msk.f32.mxu0 %vm158_vm1, %v7552_v58 }
 0x23d   :  { %8701 = vmatmul.mubr.msk.f32.gmra.mrb[62].mxu1 %vm158_vm1, %v11654_v0  ;;  %9087 = vmatmul.mubr.msk.f32.gmra.mrb[58].mxu0 %vm158_vm1, %v7553_v23  ;;  %v7557_v0 = vld [vmem:[%s12291_s0 + $0x352] sm:$0xff] }
 0x23e   :  { %9089 = vmatprep.mubr.msk.f32.mxu0 %vm158_vm1, %v7554_v32  ;;  %9097 = vmatprep.mubr.msk.f32.mxu1 %vm9643_vm3, %v9642_v37 }
 0x241   :  { %9090 = vmatmul.mubr.msk.f32.gmra.mrb[60].mxu0 %vm158_vm1, %v7555_v54 }
 0x242   :  { %9092 = vmatprep.mubr.msk.f32.mxu0 %vm158_vm1, %v7556_v49 }
 0x245   :  { %9093 = vmatmul.mubr.msk.f32.gmra.mrb[62].mxu0 %vm158_vm1, %v7557_v0 }
 0x258   :  { %v8511_v15 = vpop.f32.mrb[0].mxu1 }
 0x259   :  { %v2354_v59 = vpop.f32.mrb[1].mxu1 }
 0x25c   :  { %v8514_v8 = vpop.f32.mrb[2].mxu1 }
 0x25d   :  { %v2364_v38 = vpop.f32.mrb[3].mxu1 }
 0x260   :  { %v8517_v55 = vpop.f32.mrb[4].mxu1 }
 0x261   :  { %v2374_v48 = vpop.f32.mrb[5].mxu1 }
 0x264   :  { %v8520_v57 = vpop.f32.mrb[6].mxu1 }
 0x265   :  { %v12052_v61 = vpop.f32.mrb[7].mxu1 }
 0x268   :  { %v12054_v63 = vpop.f32.mrb[8].mxu1 }
 0x269   :  { %v12056_v6 = vpop.f32.mrb[9].mxu1 }
 0x26c   :  { %v12058_v10 = vpop.f32.mrb[10].mxu1 }
 0x26d   :  { %v12060_v14 = vpop.f32.mrb[11].mxu1 }
 0x270   :  { %v12062_v18 = vpop.f32.mrb[12].mxu1 }
 0x271   :  { %v12064_v22 = vpop.f32.mrb[13].mxu1 }
 0x274   :  { %v12066_v26 = vpop.f32.mrb[14].mxu1 }
 0x275   :  { %v12068_v31 = vpop.f32.mrb[15].mxu1 }
 0x278   :  { %v12070_v35 = vpop.f32.mrb[16].mxu1 }
 0x279   :  { %v12072_v39 = vpop.f32.mrb[17].mxu1 }
 0x27c   :  { %v12074_v42 = vpop.f32.mrb[18].mxu1 }
 0x27d   :  { %v12076_v43 = vpop.f32.mrb[19].mxu1 }
 0x280   :  { %v12078_v46 = vpop.f32.mrb[20].mxu1 }
 0x281   :  { %v12081_v41 = vpop.f32.mrb[21].mxu1 }
 0x284   :  { %v12086_v33 = vpop.f32.mrb[22].mxu1 }
 0x285   :  { %v12088_v20 = vpop.f32.mrb[23].mxu1 }
 0x288   :  { %v12090_v24 = vpop.f32.mrb[24].mxu1 }
 0x289   :  { %v12092_v12 = vpop.f32.mrb[25].mxu1 }
 0x28c   :  { %v12094_v16 = vpop.f32.mrb[26].mxu1 }
 0x28d   :  { %v12096_v2 = vpop.f32.mrb[27].mxu1 }
 0x290   :  { %v12098_v1 = vpop.f32.mrb[28].mxu1 }
 0x291   :  { %v12100_v47 = vpop.f32.mrb[29].mxu1 }
 0x294   :  { %v12102_v51 = vpop.f32.mrb[30].mxu1 }
 0x295   :  { %v12104_v62 = vpop.f32.mrb[31].mxu1 }
 0x298   :  { %v12106_v3 = vpop.f32.mrb[32].mxu1 }
 0x299   :  { %v12108_v9 = vpop.f32.mrb[33].mxu1 }
 0x29c   :  { %v9001_v13 = vpop.f32.mrb[0].mxu0 }
 0x29d   :  { %v9102_v21 = vadd.f32 %v9001_v13, %v8511_v15  ;;  %v5895_v25 = vpop.f32.mrb[1].mxu0 }
 0x29e   :  { %v9103_v30 = vadd.f32 %v5895_v25, %v2354_v59 }
 0x29f   :  { %v6286_v34 = vadd.f32 %v9102_v21, %v12113_v17 }
 0x2a0   :  { %v6285_v36 = vadd.f32 %v9103_v30, %v12113_v17  ;;  %v9004_v27 = vpop.f32.mrb[2].mxu0 }
 0x2a1   :  { %v6350_v40 = vmax.f32 %v6286_v34, 0.0  ;;  %v9104_v45 = vadd.f32 %v9004_v27, %v8514_v8  ;;  %v5905_v52 = vpop.f32.mrb[3].mxu0 }
 0x2a2   :  { %v6349_v56 = vmax.f32 %v6285_v36, 0.0  ;;  %v9105_v60 = vadd.f32 %v5905_v52, %v2364_v38 }
 0x2a3   :  { %v6415_v5 = vsel %vm6413_vm2, %v6350_v40, 0.0  ;;  %v6288_v11 = vadd.f32 %v9104_v45, %v12113_v17 }
 0x2a4   :  { %v6414_v19 = vsel %vm6413_vm2, %v6349_v56, 0.0  ;;  %v6287_v28 = vadd.f32 %v9105_v60, %v12113_v17  ;;  %v9007_v4 = vpop.f32.mrb[4].mxu0 }
 0x2a5   :  { %v6416_v53 = vadd.f32 %v6415_v5, %v6414_v19  ;;  %v9106_v50 = vadd.f32 %v9007_v4, %v8517_v55  ;;  %v5915_v58 = vpop.f32.mrb[5].mxu0  ;;  %v6352_v44 = vmax.f32 %v6288_v11, 0.0 }
 0x2a6   :  { %v6351_v7 = vmax.f32 %v6287_v28, 0.0  ;;  %v9107_v23 = vadd.f32 %v5915_v58, %v2374_v48 }
 0x2a7   :  { %v6290_v32 = vadd.f32 %v9106_v50, %v12113_v17  ;;  %v6419_v38 = vsel %vm6413_vm2, %v6352_v44, 0.0 }
 0x2a8   :  { %v6417_v54 = vsel %vm6413_vm2, %v6351_v7, 0.0  ;;  %v6289_v49 = vadd.f32 %v9107_v23, %v12113_v17  ;;  %v9010_v0 = vpop.f32.mrb[6].mxu0 }
 0x2a9   :  { %v6418_v15 = vadd.f32 %v6417_v54, %v6416_v53  ;;  %v9108_v59 = vadd.f32 %v9010_v0, %v8520_v57  ;;  %v5925_v8 = vpop.f32.mrb[7].mxu0  ;;  %v6354_v29 = vmax.f32 %v6290_v32, 0.0 }
 0x2aa   :  { %v6353_v13 = vmax.f32 %v6289_v49, 0.0  ;;  %v9109_v55 = vadd.f32 %v5925_v8, %v12052_v61 }
 0x2ab   :  { %v6420_v21 = vadd.f32 %v6419_v38, %v6418_v15  ;;  %v6292_v25 = vadd.f32 %v9108_v59, %v12113_v17  ;;  %v6423_v57 = vsel %vm6413_vm2, %v6354_v29, 0.0 }
 0x2ac   :  { %v6421_v48 = vsel %vm6413_vm2, %v6353_v13, 0.0  ;;  %v6291_v30 = vadd.f32 %v9109_v55, %v12113_v17  ;;  %v9013_v34 = vpop.f32.mrb[8].mxu0 }
 0x2ad   :  { %v6422_v36 = vadd.f32 %v6421_v48, %v6420_v21  ;;  %v9110_v27 = vadd.f32 %v9013_v34, %v12054_v63  ;;  %v5935_v40 = vpop.f32.mrb[9].mxu0  ;;  %v6356_v45 = vmax.f32 %v6292_v25, 0.0 }
 0x2ae   :  { %v6355_v52 = vmax.f32 %v6291_v30, 0.0  ;;  %v9111_v56 = vadd.f32 %v5935_v40, %v12056_v6 }
 0x2af   :  { %v6424_v61 = vadd.f32 %v6423_v57, %v6422_v36  ;;  %v6294_v60 = vadd.f32 %v9110_v27, %v12113_v17  ;;  %v6427_v53 = vsel %vm6413_vm2, %v6356_v45, 0.0 }
 0x2b0   :  { %v6425_v5 = vsel %vm6413_vm2, %v6355_v52, 0.0  ;;  %v6293_v11 = vadd.f32 %v9111_v56, %v12113_v17  ;;  %v9016_v19 = vpop.f32.mrb[10].mxu0 }
 0x2b1   :  { %v6426_v28 = vadd.f32 %v6425_v5, %v6424_v61  ;;  %v9112_v63 = vadd.f32 %v9016_v19, %v12058_v10  ;;  %v5945_v4 = vpop.f32.mrb[11].mxu0  ;;  %v6358_v50 = vmax.f32 %v6294_v60, 0.0 }
 0x2b2   :  { %v6357_v58 = vmax.f32 %v6293_v11, 0.0  ;;  %v9113_v6 = vadd.f32 %v5945_v4, %v12060_v14 }
 0x2b3   :  { %v6428_v44 = vadd.f32 %v6427_v53, %v6426_v28  ;;  %v6296_v37 = vadd.f32 %v9112_v63, %v12113_v17  ;;  %v6431_v10 = vsel %vm6413_vm2, %v6358_v50, 0.0 }
 0x2b4   :  { %v6429_v7 = vsel %vm6413_vm2, %v6357_v58, 0.0  ;;  %v6295_v23 = vadd.f32 %v9113_v6, %v12113_v17  ;;  %v9019_v32 = vpop.f32.mrb[12].mxu0 }
 0x2b5   :  { %v6430_v54 = vadd.f32 %v6429_v7, %v6428_v44  ;;  %v9114_v49 = vadd.f32 %v9019_v32, %v12062_v18  ;;  %v5955_v0 = vpop.f32.mrb[13].mxu0  ;;  %v6360_v15 = vmax.f32 %v6296_v37, 0.0 }
 0x2b6   :  { %v6359_v59 = vmax.f32 %v6295_v23, 0.0  ;;  %v9115_v8 = vadd.f32 %v5955_v0, %v12064_v22 }
 0x2b7   :  { %v6432_v38 = vadd.f32 %v6431_v10, %v6430_v54  ;;  %v6298_v14 = vadd.f32 %v9114_v49, %v12113_v17  ;;  %v6435_v18 = vsel %vm6413_vm2, %v6360_v15, 0.0 }
 0x2b8   :  { %v6433_v29 = vsel %vm6413_vm2, %v6359_v59, 0.0  ;;  %v6297_v13 = vadd.f32 %v9115_v8, %v12113_v17  ;;  %v9022_v55 = vpop.f32.mrb[14].mxu0 }
 0x2b9   :  { %v6434_v21 = vadd.f32 %v6433_v29, %v6432_v38  ;;  %v9116_v25 = vadd.f32 %v9022_v55, %v12066_v26  ;;  %v5965_v48 = vpop.f32.mrb[15].mxu0  ;;  %v6362_v30 = vmax.f32 %v6298_v14, 0.0 }
 0x2ba   :  { %v6361_v34 = vmax.f32 %v6297_v13, 0.0  ;;  %v9117_v36 = vadd.f32 %v5965_v48, %v12068_v31 }
 0x2bb   :  { %v6436_v27 = vadd.f32 %v6435_v18, %v6434_v21  ;;  %v6300_v22 = vadd.f32 %v9116_v25, %v12113_v17  ;;  %v6439_v26 = vsel %vm6413_vm2, %v6362_v30, 0.0 }
 0x2bc   :  { %v6437_v40 = vsel %vm6413_vm2, %v6361_v34, 0.0  ;;  %v6299_v57 = vadd.f32 %v9117_v36, %v12113_v17  ;;  %v9025_v45 = vpop.f32.mrb[16].mxu0 }
 0x2bd   :  { %v6438_v52 = vadd.f32 %v6437_v40, %v6436_v27  ;;  %v9118_v56 = vadd.f32 %v9025_v45, %v12070_v35  ;;  %v5975_v61 = vpop.f32.mrb[17].mxu0  ;;  %v6364_v60 = vmax.f32 %v6300_v22, 0.0 }
 0x2be   :  { %v6363_v5 = vmax.f32 %v6299_v57, 0.0  ;;  %v9119_v11 = vadd.f32 %v5975_v61, %v12072_v39 }
 0x2bf   :  { %v6440_v19 = vadd.f32 %v6439_v26, %v6438_v52  ;;  %v6302_v31 = vadd.f32 %v9118_v56, %v12113_v17  ;;  %v6443_v35 = vsel %vm6413_vm2, %v6364_v60, 0.0 }
 0x2c0   :  { %v6441_v28 = vsel %vm6413_vm2, %v6363_v5, 0.0  ;;  %v6301_v63 = vadd.f32 %v9119_v11, %v12113_v17  ;;  %v9028_v4 = vpop.f32.mrb[18].mxu0 }
 0x2c1   :  { %v6442_v53 = vadd.f32 %v6441_v28, %v6440_v19  ;;  %v9120_v50 = vadd.f32 %v9028_v4, %v12074_v42  ;;  %v5985_v58 = vpop.f32.mrb[19].mxu0  ;;  %v6366_v6 = vmax.f32 %v6302_v31, 0.0 }
 0x2c2   :  { %v6365_v44 = vmax.f32 %v6301_v63, 0.0  ;;  %v9121_v37 = vadd.f32 %v5985_v58, %v12076_v43 }
 0x2c3   :  { %v6444_v7 = vadd.f32 %v6443_v35, %v6442_v53  ;;  %v6304_v39 = vadd.f32 %v9120_v50, %v12113_v17  ;;  %v6447_v42 = vsel %vm6413_vm2, %v6366_v6, 0.0 }
 0x2c4   :  { %v6445_v23 = vsel %vm6413_vm2, %v6365_v44, 0.0  ;;  %v6303_v32 = vadd.f32 %v9121_v37, %v12113_v17  ;;  %v9031_v54 = vpop.f32.mrb[20].mxu0 }
 0x2c5   :  { %v6446_v49 = vadd.f32 %v6445_v23, %v6444_v7  ;;  %v9122_v0 = vadd.f32 %v9031_v54, %v12078_v46  ;;  %v5995_v10 = vpop.f32.mrb[21].mxu0  ;;  %v6368_v15 = vmax.f32 %v6304_v39, 0.0 }
 0x2c6   :  { %v6367_v59 = vmax.f32 %v6303_v32, 0.0  ;;  %v9123_v8 = vadd.f32 %v5995_v10, %v12081_v41 }
 0x2c7   :  { %v6448_v38 = vadd.f32 %v6447_v42, %v6446_v49  ;;  %v6306_v43 = vadd.f32 %v9122_v0, %v12113_v17  ;;  %v6451_v46 = vsel %vm6413_vm2, %v6368_v15, 0.0 }
 0x2c8   :  { %v6449_v14 = vsel %vm6413_vm2, %v6367_v59, 0.0  ;;  %v6305_v29 = vadd.f32 %v9123_v8, %v12113_v17  ;;  %v9034_v13 = vpop.f32.mrb[22].mxu0 }
 0x2c9   :  { %v6450_v55 = vadd.f32 %v6449_v14, %v6448_v38  ;;  %v9124_v21 = vadd.f32 %v9034_v13, %v12086_v33  ;;  %v6005_v25 = vpop.f32.mrb[23].mxu0  ;;  %v6370_v48 = vmax.f32 %v6306_v43, 0.0 }
 0x2ca   :  { %v6369_v18 = vmax.f32 %v6305_v29, 0.0  ;;  %v9125_v30 = vadd.f32 %v6005_v25, %v12088_v20 }
 0x2cb   :  { %v6452_v34 = vadd.f32 %v6451_v46, %v6450_v55  ;;  %v6308_v41 = vadd.f32 %v9124_v21, %v12113_v17  ;;  %v6455_v33 = vsel %vm6413_vm2, %v6370_v48, 0.0 }
 0x2cc   :  { %v6453_v36 = vsel %vm6413_vm2, %v6369_v18, 0.0  ;;  %v6307_v27 = vadd.f32 %v9125_v30, %v12113_v17  ;;  %v9037_v22 = vpop.f32.mrb[24].mxu0 }
 0x2cd   :  { %v6454_v40 = vadd.f32 %v6453_v36, %v6452_v34  ;;  %v9126_v57 = vadd.f32 %v9037_v22, %v12090_v24  ;;  %v6015_v45 = vpop.f32.mrb[25].mxu0  ;;  %v6372_v52 = vmax.f32 %v6308_v41, 0.0 }
 0x2ce   :  { %v6371_v56 = vmax.f32 %v6307_v27, 0.0  ;;  %v9127_v61 = vadd.f32 %v6015_v45, %v12092_v12 }
 0x2cf   :  { %v6456_v26 = vadd.f32 %v6455_v33, %v6454_v40  ;;  %v6310_v20 = vadd.f32 %v9126_v57, %v12113_v17  ;;  %v6459_v24 = vsel %vm6413_vm2, %v6372_v52, 0.0 }
 0x2d0   :  { %v6457_v60 = vsel %vm6413_vm2, %v6371_v56, 0.0  ;;  %v6309_v5 = vadd.f32 %v9127_v61, %v12113_v17  ;;  %v9040_v11 = vpop.f32.mrb[26].mxu0 }
 0x2d1   :  { %v6458_v19 = vadd.f32 %v6457_v60, %v6456_v26  ;;  %v9128_v31 = vadd.f32 %v9040_v11, %v12094_v16  ;;  %v6025_v28 = vpop.f32.mrb[27].mxu0  ;;  %v6374_v63 = vmax.f32 %v6310_v20, 0.0 }
 0x2d2   :  { %v6373_v4 = vmax.f32 %v6309_v5, 0.0  ;;  %v9129_v53 = vadd.f32 %v6025_v28, %v12096_v2 }
 0x2d3   :  { %v6460_v50 = vadd.f32 %v6459_v24, %v6458_v19  ;;  %v6312_v12 = vadd.f32 %v9128_v31, %v12113_v17  ;;  %v6463_v16 = vsel %vm6413_vm2, %v6374_v63, 0.0 }
 0x2d4   :  { %v6461_v58 = vsel %vm6413_vm2, %v6373_v4, 0.0  ;;  %v6311_v35 = vadd.f32 %v9129_v53, %v12113_v17  ;;  %v9043_v6 = vpop.f32.mrb[28].mxu0 }
 0x2d5   :  { %v6462_v44 = vadd.f32 %v6461_v58, %v6460_v50  ;;  %v9130_v37 = vadd.f32 %v9043_v6, %v12098_v1  ;;  %v6035_v7 = vpop.f32.mrb[29].mxu0  ;;  %v6376_v39 = vmax.f32 %v6312_v12, 0.0 }
 0x2d6   :  { %v6375_v23 = vmax.f32 %v6311_v35, 0.0  ;;  %v9131_v32 = vadd.f32 %v6035_v7, %v12100_v47 }
 0x2d7   :  { %v6464_v54 = vadd.f32 %v6463_v16, %v6462_v44  ;;  %v6314_v2 = vadd.f32 %v9130_v37, %v12113_v17  ;;  %v6467_v38 = vsel %vm6413_vm2, %v6376_v39, 0.0 }
 0x2d8   :  { %v6465_v49 = vsel %vm6413_vm2, %v6375_v23, 0.0  ;;  %v6313_v0 = vadd.f32 %v9131_v32, %v12113_v17  ;;  %v8660_v10 = vpop.f32.mrb[34].mxu1  ;;  %v9046_v42 = vpop.f32.mrb[30].mxu0 }
 0x2d9   :  { %v6466_v15 = vadd.f32 %v6465_v49, %v6464_v54  ;;  %v9132_v59 = vadd.f32 %v9046_v42, %v12102_v51  ;;  %v3232_v1 = vpop.f32.mrb[35].mxu1  ;;  %v6045_v8 = vpop.f32.mrb[31].mxu0  ;;  %v6378_v43 = vmax.f32 %v6314_v2, 0.0 }
 0x2da   :  { %v6377_v14 = vmax.f32 %v6313_v0, 0.0  ;;  %v9133_v47 = vadd.f32 %v6045_v8, %v12104_v62 }
 0x2db   :  { %v6468_v29 = vadd.f32 %v6467_v38, %v6466_v15  ;;  %v6316_v13 = vadd.f32 %v9132_v59, %v12113_v17  ;;  %v6471_v34 = vsel %vm6413_vm2, %v6378_v43, 0.0 }
 0x2dc   :  { %v6469_v55 = vsel %vm6413_vm2, %v6377_v14, 0.0  ;;  %v6315_v21 = vadd.f32 %v9133_v47, %v12113_v17  ;;  %v8663_v25 = vpop.f32.mrb[36].mxu1  ;;  %v9049_v46 = vpop.f32.mrb[32].mxu0 }
 0x2dd   :  { %v6470_v48 = vadd.f32 %v6469_v55, %v6468_v29  ;;  %v9134_v51 = vadd.f32 %v9049_v46, %v12106_v3  ;;  %v3242_v18 = vpop.f32.mrb[37].mxu1  ;;  %v6055_v30 = vpop.f32.mrb[33].mxu0  ;;  %v6380_v41 = vmax.f32 %v6316_v13, 0.0 }
 0x2de   :  { %v6379_v36 = vmax.f32 %v6315_v21, 0.0  ;;  %v9135_v62 = vadd.f32 %v6055_v30, %v12108_v9 }
 0x2df   :  { %v6472_v27 = vadd.f32 %v6471_v34, %v6470_v48  ;;  %v6318_v22 = vadd.f32 %v9134_v51, %v12113_v17  ;;  %v6475_v20 = vsel %vm6413_vm2, %v6380_v41, 0.0 }
 0x2e0   :  { %v6473_v40 = vsel %vm6413_vm2, %v6379_v36, 0.0  ;;  %v6317_v57 = vadd.f32 %v9135_v62, %v12113_v17  ;;  %v8666_v45 = vpop.f32.mrb[38].mxu1  ;;  %v9052_v33 = vpop.f32.mrb[34].mxu0 }
 0x2e1   :  { %v6474_v52 = vadd.f32 %v6473_v40, %v6472_v27  ;;  %v6382_v56 = vmax.f32 %v6318_v22, 0.0  ;;  %v9136_v3 = vadd.f32 %v9052_v33, %v8660_v10  ;;  %v3252_v61 = vpop.f32.mrb[39].mxu1  ;;  %v6065_v26 = vpop.f32.mrb[35].mxu0 }
 0x2e2   :  { %v6381_v60 = vmax.f32 %v6317_v57, 0.0  ;;  %v9137_v5 = vadd.f32 %v6065_v26, %v3232_v1 }
 0x2e3   :  { %v12209_v11 = vadd.f32 %v6475_v20, %v6474_v52  ;;  %v6484_v9 = vsel %vm6413_vm2, %v6382_v56, 0.0  ;;  %v6320_v19 = vadd.f32 %v9136_v3, %v12113_v17 }
 0x2e4   :  { %v6483_v31 = vsel %vm6413_vm2, %v6381_v60, 0.0  ;;  %v6319_v28 = vadd.f32 %v9137_v5, %v12113_v17  ;;  %v8669_v24 = vpop.f32.mrb[40].mxu1  ;;  %v9055_v63 = vpop.f32.mrb[36].mxu0 }
 0x2e5   :  { %v6485_v4 = vadd.f32 %v6484_v9, %v6483_v31  ;;  %v9138_v53 = vadd.f32 %v9055_v63, %v8663_v25  ;;  %v3262_v50 = vpop.f32.mrb[41].mxu1  ;;  %v6075_v12 = vpop.f32.mrb[37].mxu0  ;;  %v6384_v58 = vmax.f32 %v6320_v19, 0.0 }
 0x2e6   :  { %v6383_v35 = vmax.f32 %v6319_v28, 0.0  ;;  %v9139_v6 = vadd.f32 %v6075_v12, %v3242_v18 }
 0x2e7   :  { %v6322_v44 = vadd.f32 %v9138_v53, %v12113_v17  ;;  %v6488_v49 = vsel %vm6413_vm2, %v6384_v58, 0.0 }
 0x2e8   :  { %v6486_v37 = vsel %vm6413_vm2, %v6383_v35, 0.0  ;;  %v6321_v7 = vadd.f32 %v9139_v6, %v12113_v17  ;;  %v8672_v16 = vpop.f32.mrb[42].mxu1  ;;  %v9058_v39 = vpop.f32.mrb[38].mxu0 }
 0x2e9   :  { %v6487_v23 = vadd.f32 %v6486_v37, %v6485_v4  ;;  %v9140_v32 = vadd.f32 %v9058_v39, %v8666_v45  ;;  %v3272_v54 = vpop.f32.mrb[43].mxu1  ;;  %v6085_v2 = vpop.f32.mrb[39].mxu0  ;;  %v6386_v0 = vmax.f32 %v6322_v44, 0.0 }
 0x2ea   :  { %v6385_v10 = vmax.f32 %v6321_v7, 0.0  ;;  %v9141_v42 = vadd.f32 %v6085_v2, %v3252_v61 }
 0x2eb   :  { %v6489_v15 = vadd.f32 %v6488_v49, %v6487_v23  ;;  %v6324_v59 = vadd.f32 %v9140_v32, %v12113_v17  ;;  %v6492_v55 = vsel %vm6413_vm2, %v6386_v0, 0.0 }
 0x2ec   :  { %v6490_v1 = vsel %vm6413_vm2, %v6385_v10, 0.0  ;;  %v6323_v8 = vadd.f32 %v9141_v42, %v12113_v17  ;;  %v8675_v38 = vpop.f32.mrb[44].mxu1  ;;  %v9061_v43 = vpop.f32.mrb[40].mxu0 }
 0x2ed   :  { %v6491_v14 = vadd.f32 %v6490_v1, %v6489_v15  ;;  %v9142_v47 = vadd.f32 %v9061_v43, %v8669_v24  ;;  %v3282_v29 = vpop.f32.mrb[45].mxu1  ;;  %v6095_v13 = vpop.f32.mrb[41].mxu0  ;;  %v6388_v21 = vmax.f32 %v6324_v59, 0.0 }
 0x2ee   :  { %v6387_v25 = vmax.f32 %v6323_v8, 0.0  ;;  %v9143_v46 = vadd.f32 %v6095_v13, %v3262_v50 }
 0x2ef   :  { %v6493_v48 = vadd.f32 %v6492_v55, %v6491_v14  ;;  %v6326_v51 = vadd.f32 %v9142_v47, %v12113_v17  ;;  %v6496_v40 = vsel %vm6413_vm2, %v6388_v21, 0.0 }
 0x2f0   :  { %v6494_v18 = vsel %vm6413_vm2, %v6387_v25, 0.0  ;;  %v6325_v30 = vadd.f32 %v9143_v46, %v12113_v17  ;;  %v8678_v34 = vpop.f32.mrb[46].mxu1  ;;  %v9064_v41 = vpop.f32.mrb[42].mxu0 }
 0x2f1   :  { %v6495_v36 = vadd.f32 %v6494_v18, %v6493_v48  ;;  %v9144_v62 = vadd.f32 %v9064_v41, %v8672_v16  ;;  %v3292_v27 = vpop.f32.mrb[47].mxu1  ;;  %v6105_v22 = vpop.f32.mrb[43].mxu0  ;;  %v6390_v57 = vmax.f32 %v6326_v51, 0.0 }
 0x2f2   :  { %v6389_v45 = vmax.f32 %v6325_v30, 0.0  ;;  %v9145_v33 = vadd.f32 %v6105_v22, %v3272_v54 }
 0x2f3   :  { %v6497_v52 = vadd.f32 %v6496_v40, %v6495_v36  ;;  %v6328_v56 = vadd.f32 %v9144_v62, %v12113_v17  ;;  %v6500_v31 = vsel %vm6413_vm2, %v6390_v57, 0.0 }
 0x2f4   :  { %v6498_v3 = vsel %vm6413_vm2, %v6389_v45, 0.0  ;;  %v6327_v61 = vadd.f32 %v9145_v33, %v12113_v17  ;;  %v8681_v26 = vpop.f32.mrb[48].mxu1  ;;  %v9067_v20 = vpop.f32.mrb[44].mxu0 }
 0x2f5   :  { %v6499_v60 = vadd.f32 %v6498_v3, %v6497_v52  ;;  %v9146_v5 = vadd.f32 %v9067_v20, %v8675_v38  ;;  %v3302_v9 = vpop.f32.mrb[49].mxu1  ;;  %v6115_v19 = vpop.f32.mrb[45].mxu0  ;;  %v6392_v28 = vmax.f32 %v6328_v56, 0.0 }
 0x2f6   :  { %v6391_v24 = vmax.f32 %v6327_v61, 0.0  ;;  %v9147_v63 = vadd.f32 %v6115_v19, %v3282_v29 }
 0x2f7   :  { %v6501_v4 = vadd.f32 %v6500_v31, %v6499_v60  ;;  %v6330_v53 = vadd.f32 %v9146_v5, %v12113_v17  ;;  %v6504_v16 = vsel %vm6413_vm2, %v6392_v28, 0.0 }
 0x2f8   :  { %v6502_v50 = vsel %vm6413_vm2, %v6391_v24, 0.0  ;;  %v6329_v12 = vadd.f32 %v9147_v63, %v12113_v17  ;;  %v8684_v58 = vpop.f32.mrb[50].mxu1  ;;  %v9070_v35 = vpop.f32.mrb[46].mxu0 }
 0x2f9   :  { %v6503_v6 = vadd.f32 %v6502_v50, %v6501_v4  ;;  %v9148_v44 = vadd.f32 %v9070_v35, %v8678_v34  ;;  %v3312_v37 = vpop.f32.mrb[51].mxu1  ;;  %v6125_v7 = vpop.f32.mrb[47].mxu0  ;;  %v6394_v39 = vmax.f32 %v6330_v53, 0.0 }
 0x2fa   :  { %v6393_v23 = vmax.f32 %v6329_v12, 0.0  ;;  %v9149_v32 = vadd.f32 %v6125_v7, %v3292_v27 }
 0x2fb   :  { %v6505_v54 = vadd.f32 %v6504_v16, %v6503_v6  ;;  %v6332_v2 = vadd.f32 %v9148_v44, %v12113_v17  ;;  %v6508_v38 = vsel %vm6413_vm2, %v6394_v39, 0.0 }
 0x2fc   :  { %v6506_v49 = vsel %vm6413_vm2, %v6393_v23, 0.0  ;;  %v6331_v0 = vadd.f32 %v9149_v32, %v12113_v17  ;;  %v8687_v10 = vpop.f32.mrb[52].mxu1  ;;  %v9073_v42 = vpop.f32.mrb[48].mxu0 }
 0x2fd   :  { %v6507_v15 = vadd.f32 %v6506_v49, %v6505_v54  ;;  %v9150_v59 = vadd.f32 %v9073_v42, %v8681_v26  ;;  %v3322_v1 = vpop.f32.mrb[53].mxu1  ;;  %v6135_v8 = vpop.f32.mrb[49].mxu0  ;;  %v6396_v43 = vmax.f32 %v6332_v2, 0.0 }
 0x2fe   :  { %v6395_v14 = vmax.f32 %v6331_v0, 0.0  ;;  %v9151_v47 = vadd.f32 %v6135_v8, %v3302_v9 }
 0x2ff   :  { %v6509_v29 = vadd.f32 %v6508_v38, %v6507_v15  ;;  %v6334_v13 = vadd.f32 %v9150_v59, %v12113_v17  ;;  %v6512_v34 = vsel %vm6413_vm2, %v6396_v43, 0.0 }
 0x300   :  { %v6510_v55 = vsel %vm6413_vm2, %v6395_v14, 0.0  ;;  %v6333_v21 = vadd.f32 %v9151_v47, %v12113_v17  ;;  %v8690_v25 = vpop.f32.mrb[54].mxu1  ;;  %v9076_v46 = vpop.f32.mrb[50].mxu0 }
 0x301   :  { %v6511_v48 = vadd.f32 %v6510_v55, %v6509_v29  ;;  %v9152_v51 = vadd.f32 %v9076_v46, %v8684_v58  ;;  %v3332_v18 = vpop.f32.mrb[55].mxu1  ;;  %v6145_v30 = vpop.f32.mrb[51].mxu0  ;;  %v6398_v41 = vmax.f32 %v6334_v13, 0.0 }
 0x302   :  { %v6397_v36 = vmax.f32 %v6333_v21, 0.0  ;;  %v9153_v62 = vadd.f32 %v6145_v30, %v3312_v37 }
 0x303   :  { %v6513_v27 = vadd.f32 %v6512_v34, %v6511_v48  ;;  %v6336_v22 = vadd.f32 %v9152_v51, %v12113_v17  ;;  %v6516_v26 = vsel %vm6413_vm2, %v6398_v41, 0.0 }
 0x304   :  { %v6514_v40 = vsel %vm6413_vm2, %v6397_v36, 0.0  ;;  %v6335_v57 = vadd.f32 %v9153_v62, %v12113_v17  ;;  %v8693_v45 = vpop.f32.mrb[56].mxu1  ;;  %v9079_v33 = vpop.f32.mrb[52].mxu0 }
 0x305   :  { %v6515_v52 = vadd.f32 %v6514_v40, %v6513_v27  ;;  %v9154_v56 = vadd.f32 %v9079_v33, %v8687_v10  ;;  %v3342_v3 = vpop.f32.mrb[57].mxu1  ;;  %v6155_v61 = vpop.f32.mrb[53].mxu0  ;;  %v6400_v20 = vmax.f32 %v6336_v22, 0.0 }
 0x306   :  { %v6399_v60 = vmax.f32 %v6335_v57, 0.0  ;;  %v9155_v5 = vadd.f32 %v6155_v61, %v3322_v1 }
 0x307   :  { %v6517_v9 = vadd.f32 %v6516_v26, %v6515_v52  ;;  %v6338_v19 = vadd.f32 %v9154_v56, %v12113_v17  ;;  %v6520_v58 = vsel %vm6413_vm2, %v6400_v20, 0.0  ;;  %v6477_v20 = vrot.slane %v12209_v11, 4 }
 0x308   :  { %v6518_v31 = vsel %vm6413_vm2, %v6399_v60, 0.0  ;;  %v6337_v28 = vadd.f32 %v9155_v5, %v12113_v17  ;;  %v8696_v24 = vpop.f32.mrb[58].mxu1  ;;  %v9082_v63 = vpop.f32.mrb[54].mxu0 }
 0x309   :  { %v6519_v4 = vadd.f32 %v6518_v31, %v6517_v9  ;;  %v9156_v53 = vadd.f32 %v9082_v63, %v8690_v25  ;;  %v3352_v50 = vpop.f32.mrb[59].mxu1  ;;  %v6165_v12 = vpop.f32.mrb[55].mxu0  ;;  %v6402_v35 = vmax.f32 %v6338_v19, 0.0 }
 0x30a   :  { %v6401_v6 = vmax.f32 %v6337_v28, 0.0  ;;  %v9157_v44 = vadd.f32 %v6165_v12, %v3332_v18  ;;  %v6478_v12 = vadd.f32 %v6477_v20, %v12209_v11 }
 0x30b   :  { %v6521_v37 = vadd.f32 %v6520_v58, %v6519_v4  ;;  %v6340_v7 = vadd.f32 %v9156_v53, %v12113_v17  ;;  %v6524_v10 = vsel %vm6413_vm2, %v6402_v35, 0.0 }
 0x30c   :  { %v6522_v16 = vsel %vm6413_vm2, %v6401_v6, 0.0  ;;  %v6339_v39 = vadd.f32 %v9157_v44, %v12113_v17  ;;  %v8699_v23 = vpop.f32.mrb[60].mxu1  ;;  %v9085_v32 = vpop.f32.mrb[56].mxu0 }
 0x30d   :  { %v6523_v54 = vadd.f32 %v6522_v16, %v6521_v37  ;;  %v9158_v2 = vadd.f32 %v9085_v32, %v8693_v45  ;;  %v3362_v49 = vpop.f32.mrb[61].mxu1  ;;  %v6175_v0 = vpop.f32.mrb[57].mxu0  ;;  %v6404_v42 = vmax.f32 %v6340_v7, 0.0  ;;  %v6479_v16 = vrot.slane %v6478_v12, 2 }
 0x30e   :  { %v6403_v15 = vmax.f32 %v6339_v39, 0.0  ;;  %v9159_v59 = vadd.f32 %v6175_v0, %v3342_v3 }
 0x30f   :  { %v6525_v1 = vadd.f32 %v6524_v10, %v6523_v54  ;;  %v6342_v8 = vadd.f32 %v9158_v2, %v12113_v17  ;;  %v6528_v25 = vsel %vm6413_vm2, %v6404_v42, 0.0  ;;  %v6480_v54 = vadd.f32 %v6479_v16, %v6478_v12 }
 0x310   :  { %v6526_v38 = vsel %vm6413_vm2, %v6403_v15, 0.0  ;;  %v6341_v43 = vadd.f32 %v9159_v59, %v12113_v17  ;;  %v8702_v14 = vpop.f32.mrb[62].mxu1  ;;  %v9088_v47 = vpop.f32.mrb[58].mxu0 }
 0x311   :  { %v6527_v29 = vadd.f32 %v6526_v38, %v6525_v1  ;;  %v9160_v13 = vadd.f32 %v9088_v47, %v8696_v24  ;;  %v3372_v55 = vpop.f32.mrb[63].mxu1  ;;  %v6185_v21 = vpop.f32.mrb[59].mxu0  ;;  %v6406_v46 = vmax.f32 %v6342_v8, 0.0  ;;  %v6481_v0 = vrot.slane %v6480_v54, 1  ;;  %v7624_v38 = vld [vmem:[%s12295_s4] ss:$0 sm:$0xff] }
 0x312   :  { %v6405_v48 = vmax.f32 %v6341_v43, 0.0  ;;  %v9161_v51 = vadd.f32 %v6185_v21, %v3352_v50 }
 0x313   :  { %v6529_v18 = vadd.f32 %v6528_v25, %v6527_v29  ;;  %v6344_v30 = vadd.f32 %v9160_v13, %v12113_v17  ;;  %v6532_v40 = vsel %vm6413_vm2, %v6406_v46, 0.0  ;;  %v6482_v42 = vadd.f32 %v6481_v0, %v6480_v54 }
 0x314   :  { %v6530_v34 = vsel %vm6413_vm2, %v6405_v48, 0.0  ;;  %v6343_v41 = vadd.f32 %v9161_v51, %v12113_v17  ;;  %v9091_v36 = vpop.f32.mrb[60].mxu0 }
 0x315   :  { %v6531_v62 = vadd.f32 %v6530_v34, %v6529_v18  ;;  %v9162_v27 = vadd.f32 %v9091_v36, %v8699_v23  ;;  %v6195_v22 = vpop.f32.mrb[61].mxu0  ;;  %v6408_v57 = vmax.f32 %v6344_v30, 0.0  ;;  %v6552_v59 = vmul.f32 0.00390625, %v6482_v42 }
 0x316   :  { %v6407_v45 = vmax.f32 %v6343_v41, 0.0  ;;  %v9163_v33 = vadd.f32 %v6195_v22, %v3362_v49 }
 0x317   :  { %v6533_v52 = vadd.f32 %v6532_v40, %v6531_v62  ;;  %v6346_v56 = vadd.f32 %v9162_v27, %v12113_v17  ;;  %v6536_v19 = vsel %vm6413_vm2, %v6408_v57, 0.0 }
 0x318   :  { %v6534_v3 = vsel %vm6413_vm2, %v6407_v45, 0.0  ;;  %v6345_v61 = vadd.f32 %v9163_v33, %v12113_v17  ;;  %v9094_v26 = vpop.f32.mrb[62].mxu0 }
 0x319   :  { %v6535_v60 = vadd.f32 %v6534_v3, %v6533_v52  ;;  %v9164_v5 = vadd.f32 %v9094_v26, %v8702_v14  ;;  %v6205_v9 = vpop.f32.mrb[63].mxu0  ;;  %v6410_v31 = vmax.f32 %v6346_v56, 0.0 }
 0x31a   :  { %v6409_v28 = vmax.f32 %v6345_v61, 0.0  ;;  %v9165_v24 = vadd.f32 %v6205_v9, %v3372_v55 }
 0x31b   :  { %v6537_v63 = vadd.f32 %v6536_v19, %v6535_v60  ;;  %v6348_v4 = vadd.f32 %v9164_v5, %v12113_v17  ;;  %v6540_v35 = vsel %vm6413_vm2, %v6410_v31, 0.0 }
 0x31c   :  { %v6538_v53 = vsel %vm6413_vm2, %v6409_v28, 0.0  ;;  %v6347_v50 = vadd.f32 %v9165_v24, %v12113_v17 }
 0x31d   :  { %v6539_v58 = vadd.f32 %v6538_v53, %v6537_v63  ;;  %v6412_v6 = vmax.f32 %v6348_v4, 0.0 }
 0x31e   :  { %v6411_v44 = vmax.f32 %v6347_v50, 0.0 }
 0x31f   :  { %v6541_v37 = vadd.f32 %v6540_v35, %v6539_v58  ;;  %v6544_v23 = vsel %vm6413_vm2, %v6412_v6, 0.0 }
 0x320   :  { %v6542_v7 = vsel %vm6413_vm2, %v6411_v44, 0.0 }
 0x321   :  { %v6543_v39 = vadd.f32 %v6542_v7, %v6541_v37 }
 0x323   :  { %v6545_v32 = vadd.f32 %v6544_v23, %v6543_v39 }
 0x325   :  { %v6546_v2 = vrot.slane %v6545_v32, 4 }
 0x327   :  { %v6547_v49 = vadd.f32 %v6546_v2, %v6545_v32 }
 0x329   :  { %v6548_v17 = vrot.slane %v6547_v49, 2 }
 0x32b   :  { %v6549_v10 = vadd.f32 %v6548_v17, %v6547_v49 }
 0x32d   :  { %v6550_v11 = vrot.slane %v6549_v10, 1 }
 0x32f   :  { %v6551_v15 = vadd.f32 %v6550_v11, %v6549_v10 }
 0x331   :  { %v6553_v1 = vmul.f32 0.00390625, %v6551_v15 }
 0x333   :  { %v6565_v8 = vsel %vm6564_vm4, %v6553_v1, %v6552_v59 }
 0x334   :  { %9098 = vmatmul.mubr.msk.f32.vlgmr.msra.gmra.mrb[64].mxu1 %vm6413_vm2, %v6565_v8 }
 0x407   :  { %v6634_v43 = vpop.f32.mrb[64].mxu1 }
 0x408   :  { %v6635_v14 = vadd.f32 %v7624_v38, %v6634_v43  ;;  %v9099_v47 = vpop.f32.mrb[65].mxu1 }
 0x40a   :  { %6639 = vst.msk [vmem:[#allocation2] sm:$0x3] %vm6638_vm5, %v6635_v14 }
 0x40b   :  { %9629 = shalt.err (!%p9626_p4)
}
 0x40c   :  { %s9630_s18 = scalar_lea.hbm %s12296_s5, 32 }
 0x40d   :  { %p9631_p5 = scmp.ne.s32.totalorder %s12296_s5, %s9630_s18  ;;  %p9634_p6 = scmp.lt.u32.totalorder %s9630_s18, %s12296_s5 }
 0x40f   :  { %p9636_p7 = pnand %p9634_p6, %p9631_p5 }
 0x411   :  { %9639 = shalt.err (!%p9636_p7)
}
 0x412   :  { %6649 = dma.vmem_to_hbm [thread:$0]  %s6647_s14, 32, %s12296_s5, [#allocation3]  }
 0x413   :  { %9640 = dma.done.wait [#allocation3], 32  }
 0x414   :  { %9641 = vsyncadd [#allocation3], 4294967264 }
 0x415   :  { %6653 = vsyncpa [#allocation3], 1 }

</bundles_post_ra>
